<compile_context>
chip_gen: v6e
topology: v6e:2x2x1
jax: 0.10.0
libtpu: 0.0.40
codegen_flags: <defaults>
</compile_context>

<pallas_src>
import functools

import jax
import jax.numpy as jnp
from jax import lax
from jax.experimental import pallas as pl
from jax.experimental.pallas import tpu as pltpu


# ------------------------------- fused kernel -------------------------------


def _fused_ir_kernel(*refs, stride, H, W, TO, Wo, r0_last, has_expand, use_res,
                     oup, chp, ck, tile_axis, compute_dtype, hidden_dtype):
    if has_expand:
        (x_ref, w1_ref, b1_ref, wdw_ref, b2_ref, w3_ref, b3_ref,
         o_ref, hp_ref) = refs
    else:
        x_ref, wdw_ref, b2_ref, w3_ref, b3_ref, o_ref, hp_ref = refs

    HS = hp_ref.shape[0]                 # stride*(TO-1) + 3 window rows
    inp = x_ref.shape[-1]
    oupp = o_ref.shape[-1]               # oup padded to a multiple of 128 lanes
    n_chunks = chp // ck

    def _ds(start, size):                # stride-aware window slice
        return pl.ds(start, size, stride) if stride > 1 else pl.ds(start, size)

    t = pl.program_id(tile_axis)
    r0 = pl.multiple_of(t * (TO * stride), TO * stride)   # first padded-x row

    # ---- 1) expansion 1x1 conv + BN + ReLU6 -> haloed hidden scratch -------
    # hidden interior stored at W-offset 0 (sublane-aligned stores); columns
    # W, W+1 hold the zero W-halo.
    xwin = x_ref[0, pl.ds(r0, HS), :, :]                   # (HS, W, inp) f32
    if has_expand:
        x2d = xwin.reshape(HS * W, inp).astype(compute_dtype)
        for c in range(n_chunks):
            csl = pl.ds(c * ck, ck)
            h = jnp.dot(x2d, w1_ref[:, csl],
                        preferred_element_type=jnp.float32)
            h = jnp.clip(h + b1_ref[:, csl], 0.0, 6.0)
            hp_ref[:, 0:W, csl] = h.reshape(HS, W, ck).astype(hidden_dtype)
    else:
        hp_ref[:, 0:W, :] = xwin.astype(hidden_dtype)

    # ---- 2) zero ONLY the halo (2 W columns + H zero-padding rows) ---------
    hp_ref[:, W:W + 2, :] = jnp.zeros((HS, 2, chp), hidden_dtype)

    @pl.when(r0 == 0)                    # top zero-padding row (tile 0 only)
    def _():
        hp_ref[0:1, :, :] = jnp.zeros((1, W + 2, chp), hidden_dtype)

    j_bot = H + 1 - r0_last              # first bottom-pad row of the LAST tile
    if j_bot < HS:
        @pl.when(r0 == r0_last)
        def _():
            hp_ref[j_bot:HS, :, :] = jnp.zeros((HS - j_bot, W + 2, chp),
                                               hidden_dtype)

    # ---- 3) depthwise 3x3 + BN + ReLU6, then 1x1 projection, chp-chunked ---
    wmask = lax.broadcasted_iota(jnp.int32, (1, Wo, ck), 1) > 0
    y = jnp.zeros((TO * Wo, oupp), jnp.float32)
    for c in range(n_chunks):
        csl = pl.ds(c * ck, ck)
        wdw = wdw_ref[:, csl]                               # (9, ck) f32
        acc = jnp.zeros((TO, Wo, ck), jnp.float32)
        for kh in range(3):
            rows = _ds(kh, TO)
            # center / right taps: aligned (or stride-strided) ref slices
            p1 = hp_ref[rows, _ds(0, Wo), csl].astype(jnp.float32)
            p2 = hp_ref[rows, _ds(1, Wo), csl].astype(jnp.float32)
            # left tap: reuse the slice, shift right by one output column on
            # the XLU (sublane roll) and zero the left edge column.
            a0 = p1 if stride == 1 else p2
            p0 = jnp.where(wmask, pltpu.roll(a0, shift=1, axis=1), 0.0)
            acc = (acc + p0 * wdw[3 * kh + 0] + p1 * wdw[3 * kh + 1]
                   + p2 * wdw[3 * kh + 2])
        h2 = jnp.clip(acc + b2_ref[:, csl], 0.0, 6.0)
        h2d = h2.reshape(TO * Wo, ck).astype(compute_dtype)
        y = y + jnp.dot(h2d, w3_ref[csl, :], preferred_element_type=jnp.float32)
    y = y + b3_ref[...]

    # ---- 4) residual (stride==1 and inp==oup), fp32 epilogue ---------------
    if use_res:
        res = x_ref[0, pl.ds(r0 + 1, TO), :, :].reshape(TO * Wo, inp)
        if oupp > oup:
            res = jnp.pad(res, ((0, 0), (0, oupp - oup)))
        y = y + res
    o_ref[...] = y.reshape(1, TO, Wo, oupp).astype(o_ref.dtype)


# ------------------------------ kernel wrapper -------------------------------


def _round_up(x, m):
    return (x + m - 1) // m * m


def _pad_last(a, new_size):
    pad = new_size - a.shape[-1]
    if pad == 0:
        return a
    return jnp.pad(a, [(0, 0)] * (a.ndim - 1) + [(0, pad)])


def inverted_residual_forward(params, x_nchw, *, inp, oup, stride, expand_ratio,
                              compute_dtype=jnp.bfloat16, row_tile=8):
    assert stride in (1, 2)
    N, _, H, W = x_nchw.shape
    hidden = params["hidden"]
    has_expand = expand_ratio != 1
    use_res = (stride == 1) and (inp == oup)

    Ho = (H - 1) // stride + 1           # 3x3 conv, pad 1
    Wo = (W - 1) // stride + 1

    hidden_dtype = jnp.bfloat16 if compute_dtype == jnp.bfloat16 else jnp.float32
    hid_isz = jnp.dtype(hidden_dtype).itemsize
    chp = _round_up(hidden, 128) if has_expand else hidden   # lane-padded hidden
    ck = 128 if chp % 128 == 0 else chp                      # chp chunk width
    oupp = _round_up(oup, 128)                               # lane-dense output

    # output-row tile: aim for ~128 projection-matmul rows, cap the hidden
    # scratch at ~8 MiB, and allow a ragged (padded) last tile.
    TO = min(Ho, max(row_tile, pl.cdiv(128, Wo)))
    while TO > 1 and (stride * (TO - 1) + 3) * (W + 2) * chp * hid_isz > 8 << 20:
        TO -= 1
    T = pl.cdiv(Ho, TO)
    Ho_pad = T * TO
    HS = stride * (TO - 1) + 3
    r0_last = stride * TO * (T - 1)

    # NCHW -> NHWC, fp32, plus 1 top halo row and enough bottom rows for the
    # halo / ragged tail (bottom pad rows are zeros, like the conv padding).
    P = stride * (Ho_pad - 1) + 3
    x = jnp.transpose(x_nchw, (0, 2, 3, 1)).astype(jnp.float32)
    x = jnp.pad(x, ((0, 0), (1, P - H - 1), (0, 0), (0, 0)))
    # TODO(synk): for large images switch in_specs[0] to a per-tile HS-row
    # window (pl.ANY + manual DMA) instead of a whole-image block per batch.

    # ---- fold inference BatchNorm into the conv weights; pad lanes ----------
    s2, b2 = params["bn2"]
    s3, b3 = params["bn3"]
    wdw_f = _pad_last(params["w_dw"] * s2[None, :], chp)                 # (9, chp)
    b2_f = _pad_last(b2, chp).reshape(1, chp)
    w3_f = jnp.pad(params["w_proj"] * s3[None, :],
                   ((0, chp - hidden), (0, oupp - oup)))                 # (chp, oupp)
    b3_f = _pad_last(b3, oupp).reshape(1, oupp)

    # grid ordering: put the larger extent first (megacore / v7x sharding)
    if T >= N:
        grid, tile_axis = (T, N), 0
        bt = lambda i, j: (j, i)         # (batch, tile)
    else:
        grid, tile_axis = (N, T), 1
        bt = lambda i, j: (i, j)
    x_map = lambda i, j: (bt(i, j)[0], 0, 0, 0)
    o_map = lambda i, j: (bt(i, j)[0], bt(i, j)[1], 0, 0)
    w_map = lambda i, j: (0, 0)

    inputs = [x]
    in_specs = [pl.BlockSpec((1, P, W, inp), x_map)]
    if has_expand:
        s1, b1 = params["bn1"]
        w1_f = _pad_last(params["w_expand"] * s1[None, :], chp).astype(compute_dtype)
        inputs += [w1_f, _pad_last(b1, chp).reshape(1, chp)]
        in_specs += [pl.BlockSpec((inp, chp), w_map),
                     pl.BlockSpec((1, chp), w_map)]
    inputs += [wdw_f, b2_f, w3_f.astype(compute_dtype), b3_f]
    in_specs += [pl.BlockSpec((9, chp), w_map),
                 pl.BlockSpec((1, chp), w_map),
                 pl.BlockSpec((chp, oupp), w_map),
                 pl.BlockSpec((1, oupp), w_map)]

    kernel = functools.partial(
        _fused_ir_kernel, stride=stride, H=H, W=W, TO=TO, Wo=Wo,
        r0_last=r0_last, has_expand=has_expand, use_res=use_res, oup=oup,
        chp=chp, ck=ck, tile_axis=tile_axis, compute_dtype=compute_dtype,
        hidden_dtype=hidden_dtype)

    flops = (2 * N * H * W * inp * (hidden if has_expand else 0)
             + 2 * N * Ho * Wo * 9 * hidden
             + 2 * N * Ho * Wo * hidden * oup)
    param_bytes = sum(int(a.size) * a.dtype.itemsize for a in inputs[1:])
    bytes_accessed = int(x.size) * 4 + param_bytes + 4 * N * Ho_pad * Wo * oupp
    vmem_est = (2 * P * W * inp * 4                 # double-buffered input block
                + 2 * TO * Wo * oupp * 4            # double-buffered output block
                + 2 * param_bytes                   # weight blocks
                + HS * (W + 2) * chp * hid_isz)     # hidden scratch
    vmem_limit = int(min(96 << 20, max(16 << 20, 2 * vmem_est)))

    y = pl.pallas_call(
        kernel,
        out_shape=jax.ShapeDtypeStruct((N, Ho_pad, Wo, oupp), jnp.float32),
        grid=grid,
        in_specs=in_specs,
        out_specs=pl.BlockSpec((1, TO, Wo, oupp), o_map),
        scratch_shapes=[pltpu.VMEM((HS, W + 2, chp), hidden_dtype)],
        compiler_params=pltpu.CompilerParams(
            dimension_semantics=("parallel", "parallel"),
            vmem_limit_bytes=vmem_limit),
        cost_estimate=pl.CostEstimate(
            flops=int(flops), transcendentals=0,
            bytes_accessed=int(bytes_accessed)),
    )(*inputs)

    y = y[:, :Ho, :, :oup]                          # drop ragged rows / pad lanes
    return jnp.transpose(y, (0, 3, 1, 2))           # back to NCHW


# ---------------------------- parameter handling -----------------------------


def _bn_fold(keys, c):
    gamma = jax.random.uniform(keys[0], (c,), minval=0.5, maxval=1.5)
    beta = jax.random.normal(keys[1], (c,)) * 0.1
    mean = jax.random.normal(keys[2], (c,)) * 0.1
    var = jax.random.uniform(keys[3], (c,), minval=0.5, maxval=1.5)
    scale = gamma / jnp.sqrt(var + 1e-5)
    bias = beta - mean * scale
    return scale.astype(jnp.float32), bias.astype(jnp.float32)


def init_inverted_residual_params(key, inp, oup, expand_ratio):
    hidden = int(round(inp * expand_ratio))
    ks = jax.random.split(key, 16)
    params = {"hidden": hidden}
    if expand_ratio != 1:
        params["w_expand"] = (
            jax.random.normal(ks[0], (inp, hidden)) * 0.1).astype(jnp.float32)
        params["bn1"] = _bn_fold(ks[1:5], hidden)
    params["w_dw"] = (jax.random.normal(ks[5], (9, hidden)) * 0.1).astype(jnp.float32)
    params["bn2"] = _bn_fold(ks[6:10], hidden)
    params["w_proj"] = (jax.random.normal(ks[10], (hidden, oup)) * 0.1).astype(jnp.float32)
    params["bn3"] = _bn_fold(ks[11:15], oup)
    return params


# ----------------------------- pure-JAX reference ----------------------------


def _reference_forward(params, x_nchw, *, inp, oup, stride, expand_ratio):
    x = jnp.transpose(x_nchw, (0, 2, 3, 1)).astype(jnp.float32)
    dn = ("NHWC", "HWIO", "NHWC")
    h = x
    if expand_ratio != 1:
        w = params["w_expand"].reshape(1, 1, inp, params["hidden"])
        s, b = params["bn1"]
        h = lax.conv_general_dilated(h, w, (1, 1), "VALID", dimension_numbers=dn)
        h = jnp.clip(h * s + b, 0.0, 6.0)
    hidden = params["hidden"]
    wdw = params["w_dw"].reshape(3, 3, 1, hidden)
    s, b = params["bn2"]
    h = lax.conv_general_dilated(
        h, wdw, (stride, stride), ((1, 1), (1, 1)),
        dimension_numbers=dn, feature_group_count=hidden)
    h = jnp.clip(h * s + b, 0.0, 6.0)
    wp = params["w_proj"].reshape(1, 1, hidden, oup)
    s, b = params["bn3"]
    h = lax.conv_general_dilated(h, wp, (1, 1), "VALID", dimension_numbers=dn)
    h = h * s + b
    if stride == 1 and inp == oup:
        h = h + x
    return jnp.transpose(h, (0, 3, 1, 2))


# ------------------------------------ main ------------------------------------

if __name__ == "__main__":
    key = jax.random.PRNGKey(0)
    N = 2
    configs = [
        # (inp, oup, stride, expand_ratio, H, W)
        (4, 4, 1, 6, 16, 16),    # expansion + residual connection
        (4, 8, 2, 6, 16, 16),    # expansion + stride-2 downsample
        (8, 8, 1, 1, 16, 16),    # expand_ratio == 1 (no expansion) + residual
        (4, 4, 1, 6, 18, 16),    # ragged output-row tiling (Ho % TO != 0)
    ]
    for (inp, oup, stride, er, H, W) in configs:
        key, kx, kp = jax.random.split(key, 3)
        x = jax.random.normal(kx, (N, inp, H, W), dtype=jnp.float32)  # NCHW
        params = init_inverted_residual_params(kp, inp, oup, er)
        ref = _reference_forward(
            params, x, inp=inp, oup=oup, stride=stride, expand_ratio=er)

        # f32 path (fp32 hidden scratch) and bf16 MXU/scratch path (fp32 accum).
        # Tolerances account for MXU operand rounding on the matmul paths.
        for cdt, tol in ((jnp.float32, 2e-2), (jnp.bfloat16, 1.5e-1)):
            out = inverted_residual_forward(
                params, x, inp=inp, oup=oup, stride=stride, expand_ratio=er,
                compute_dtype=cdt)
            out = jax.block_until_ready(out)
            assert out.shape == ref.shape, (out.shape, ref.shape)
            err = float(jnp.max(jnp.abs(out - ref)))
            assert jnp.allclose(out, ref, atol=tol, rtol=tol), (
                inp, oup, stride, er, str(cdt), err)

    print("KERNEL_OK")
</pallas_src>

<mosaic_0001>
module attributes {stable_mosaic.version = 11 : i64} {
  func.func @_fused_ir_kernel(%arg0: i32, %arg1: i32, %arg2: memref<1x18x16x4xf32, #tpu.memory_space<vmem>>, %arg3: memref<4x128xf32, #tpu.memory_space<vmem>>, %arg4: memref<1x128xf32, #tpu.memory_space<vmem>>, %arg5: memref<9x128xf32, #tpu.memory_space<vmem>>, %arg6: memref<1x128xf32, #tpu.memory_space<vmem>>, %arg7: memref<128x128xf32, #tpu.memory_space<vmem>>, %arg8: memref<1x128xf32, #tpu.memory_space<vmem>>, %arg9: memref<1x8x16x128xf32, #tpu.memory_space<vmem>>, %arg10: memref<10x18x128xf32, #tpu.memory_space<vmem>>) attributes {dimension_semantics = [#tpu.dimension_semantics<parallel>, #tpu.dimension_semantics<parallel>], iteration_bounds = array<i64: 2, 2>, scalar_prefetch = 0 : i64, scratch_operands = 1 : i64, tpu.core_type = #tpu.core_type<tc>, window_params = [{transform_indices = @transform_0, window_bounds = array<i64: 1, 18, 16, 4>}, {pipeline_mode = #tpu.pipeline_mode<synchronous>, transform_indices = @transform_1, window_bounds = array<i64: 4, 128>}, {pipeline_mode = #tpu.pipeline_mode<synchronous>, transform_indices = @transform_2, window_bounds = array<i64: 1, 128>}, {pipeline_mode = #tpu.pipeline_mode<synchronous>, transform_indices = @transform_3, window_bounds = array<i64: 9, 128>}, {pipeline_mode = #tpu.pipeline_mode<synchronous>, transform_indices = @transform_4, window_bounds = array<i64: 1, 128>}, {pipeline_mode = #tpu.pipeline_mode<synchronous>, transform_indices = @transform_5, window_bounds = array<i64: 128, 128>}, {pipeline_mode = #tpu.pipeline_mode<synchronous>, transform_indices = @transform_6, window_bounds = array<i64: 1, 128>}, {transform_indices = @transform_7, window_bounds = array<i64: 1, 8, 16, 128>}]} {
    %c8_i32 = arith.constant 8 : i32
    %0 = arith.muli %arg0, %c8_i32 : i32
    %1 = tpu.assume_multiple %0, 8 : i32
    %c0 = arith.constant 0 : index
    %2 = arith.index_cast %1 : i32 to index
    %c0_0 = arith.constant 0 : index
    %c0_1 = arith.constant 0 : index
    %3 = vector.load %arg2[%c0, %2, %c0_0, %c0_1] : memref<1x18x16x4xf32, #tpu.memory_space<vmem>>, vector<1x10x16x4xf32>
    %4 = vector.shape_cast %3 : vector<1x10x16x4xf32> to vector<10x16x4xf32>
    %5 = vector.shape_cast %4 : vector<10x16x4xf32> to vector<160x4xf32>
    %c0_2 = arith.constant 0 : index
    %c0_3 = arith.constant 0 : index
    %6 = vector.load %arg3[%c0_2, %c0_3] : memref<4x128xf32, #tpu.memory_space<vmem>>, vector<4x128xf32>
    %cst = arith.constant dense<0.000000e+00> : vector<160x128xf32>
    %7 = tpu.matmul %5, %6, %cst {dimension_numbers = #tpu.dot_dimension_numbers<[1], [0], [0], [1], [0, 0, 1, 1], [], []>} : vector<160x4xf32>, vector<4x128xf32>, vector<160x128xf32> -> vector<160x128xf32>
    %c0_4 = arith.constant 0 : index
    %c0_5 = arith.constant 0 : index
    %8 = vector.load %arg4[%c0_4, %c0_5] : memref<1x128xf32, #tpu.memory_space<vmem>>, vector<1x128xf32>
    %9 = vector.broadcast %8 : vector<1x128xf32> to vector<160x128xf32>
    %10 = arith.addf %7, %9 : vector<160x128xf32>
    %cst_6 = arith.constant 0.000000e+00 : f32
    %cst_7 = arith.constant 6.000000e+00 : f32
    %11 = vector.broadcast %cst_6 : f32 to vector<160x128xf32>
    %12 = arith.maximumf %11, %10 : vector<160x128xf32>
    %13 = vector.broadcast %cst_7 : f32 to vector<160x128xf32>
    %14 = arith.minimumf %13, %12 : vector<160x128xf32>
    %15 = vector.shape_cast %14 : vector<160x128xf32> to vector<10x16x128xf32>
    %c0_8 = arith.constant 0 : index
    %c0_9 = arith.constant 0 : index
    %c0_10 = arith.constant 0 : index
    %16 = vector.load %arg10[%c0_8, %c0_9, %c0_10] : memref<10x18x128xf32, #tpu.memory_space<vmem>>, vector<10x16x128xf32>
    tpu.vector_store %arg10[%c0_8, %c0_9, %c0_10], %15 {strides = array<i32>} : memref<10x18x128xf32, #tpu.memory_space<vmem>>, vector<10x16x128xf32>,
    %cst_11 = arith.constant 0.000000e+00 : f32
    %17 = vector.broadcast %cst_11 : f32 to vector<10x2x128xf32>
    %c0_12 = arith.constant 0 : index
    %c16 = arith.constant 16 : index
    %c0_13 = arith.constant 0 : index
    %18 = vector.load %arg10[%c0_12, %c16, %c0_13] : memref<10x18x128xf32, #tpu.memory_space<vmem>>, vector<10x2x128xf32>
    tpu.vector_store %arg10[%c0_12, %c16, %c0_13], %17 {strides = array<i32>} : memref<10x18x128xf32, #tpu.memory_space<vmem>>, vector<10x2x128xf32>,
    %c0_i32 = arith.constant 0 : i32
    %19 = arith.cmpi eq, %1, %c0_i32 : i32
    %20 = arith.extui %19 : i1 to i32
    %c0_i32_14 = arith.constant 0 : i32
    %21 = arith.cmpi ne, %20, %c0_i32_14 : i32
    scf.if %21 {
      %cst_61 = arith.constant 0.000000e+00 : f32
      %132 = vector.broadcast %cst_61 : f32 to vector<1x18x128xf32>
      %c0_62 = arith.constant 0 : index
      %c0_63 = arith.constant 0 : index
      %c0_64 = arith.constant 0 : index
      %133 = vector.load %arg10[%c0_62, %c0_63, %c0_64] : memref<10x18x128xf32, #tpu.memory_space<vmem>>, vector<1x18x128xf32>
      tpu.vector_store %arg10[%c0_62, %c0_63, %c0_64], %132 {strides = array<i32>} : memref<10x18x128xf32, #tpu.memory_space<vmem>>, vector<1x18x128xf32>,
    } else {
    }
    %c8_i32_15 = arith.constant 8 : i32
    %22 = arith.cmpi eq, %1, %c8_i32_15 : i32
    %23 = arith.extui %22 : i1 to i32
    %c0_i32_16 = arith.constant 0 : i32
    %24 = arith.cmpi ne, %23, %c0_i32_16 : i32
    scf.if %24 {
      %cst_61 = arith.constant 0.000000e+00 : f32
      %132 = vector.broadcast %cst_61 : f32 to vector<1x18x128xf32>
      %c9 = arith.constant 9 : index
      %c0_62 = arith.constant 0 : index
      %c0_63 = arith.constant 0 : index
      %133 = vector.load %arg10[%c9, %c0_62, %c0_63] : memref<10x18x128xf32, #tpu.memory_space<vmem>>, vector<1x18x128xf32>
      tpu.vector_store %arg10[%c9, %c0_62, %c0_63], %132 {strides = array<i32>} : memref<10x18x128xf32, #tpu.memory_space<vmem>>, vector<1x18x128xf32>,
    } else {
    }
    %25 = tpu.iota {dimensions = array<i32: 1>} : vector<1x16x128xi32>
    %c0_i32_17 = arith.constant 0 : i32
    %26 = vector.broadcast %c0_i32_17 : i32 to vector<1x16x128xi32>
    %27 = arith.cmpi sgt, %25, %26 : vector<1x16x128xi32>
    %cst_18 = arith.constant 0.000000e+00 : f32
    %28 = vector.broadcast %cst_18 : f32 to vector<128x128xf32>
    %c0_19 = arith.constant 0 : index
    %c0_20 = arith.constant 0 : index
    %29 = vector.load %arg5[%c0_19, %c0_20] : memref<9x128xf32, #tpu.memory_space<vmem>>, vector<9x128xf32>
    %cst_21 = arith.constant 0.000000e+00 : f32
    %30 = vector.broadcast %cst_21 : f32 to vector<8x16x128xf32>
    %c0_22 = arith.constant 0 : index
    %c0_23 = arith.constant 0 : index
    %c0_24 = arith.constant 0 : index
    %31 = vector.load %arg10[%c0_22, %c0_23, %c0_24] : memref<10x18x128xf32, #tpu.memory_space<vmem>>, vector<8x16x128xf32>
    %c0_25 = arith.constant 0 : index
    %c1 = arith.constant 1 : index
    %c0_26 = arith.constant 0 : index
    %32 = vector.load %arg10[%c0_25, %c1, %c0_26] : memref<10x18x128xf32, #tpu.memory_space<vmem>>, vector<8x16x128xf32>
    %c1_i32 = arith.constant 1 : i32
    %33 = tpu.dynamic_rotate %31 by %c1_i32 dim 1 : vector<8x16x128xf32>, i32 -> vector<8x16x128xf32>
    %cst_27 = arith.constant 0.000000e+00 : f32
    %34 = vector.shape_cast %27 : vector<1x16x128xi1> to vector<1x16x128xi1>
    %35 = vector.broadcast %34 : vector<1x16x128xi1> to vector<8x16x128xi1>
    %36 = vector.broadcast %cst_27 : f32 to vector<8x16x128xf32>
    %37 = arith.select %35, %33, %36 : vector<8x16x128xi1>, vector<8x16x128xf32>
    %38 = vector.extract_strided_slice %29 {offsets = [0, 0], sizes = [1, 128], strides = [1, 1]} : vector<9x128xf32> to vector<1x128xf32>
    %39 = vector.shape_cast %38 : vector<1x128xf32> to vector<128xf32>
    %40 = vector.shape_cast %39 : vector<128xf32> to vector<1x1x128xf32>
    %41 = vector.broadcast %40 : vector<1x1x128xf32> to vector<8x16x128xf32>
    %42 = arith.mulf %37, %41 : vector<8x16x128xf32>
    %43 = arith.addf %30, %42 : vector<8x16x128xf32>
    %44 = vector.extract_strided_slice %29 {offsets = [1, 0], sizes = [1, 128], strides = [1, 1]} : vector<9x128xf32> to vector<1x128xf32>
    %45 = vector.shape_cast %44 : vector<1x128xf32> to vector<128xf32>
    %46 = vector.shape_cast %45 : vector<128xf32> to vector<1x1x128xf32>
    %47 = vector.broadcast %46 : vector<1x1x128xf32> to vector<8x16x128xf32>
    %48 = arith.mulf %31, %47 : vector<8x16x128xf32>
    %49 = arith.addf %43, %48 : vector<8x16x128xf32>
    %50 = vector.extract_strided_slice %29 {offsets = [2, 0], sizes = [1, 128], strides = [1, 1]} : vector<9x128xf32> to vector<1x128xf32>
    %51 = vector.shape_cast %50 : vector<1x128xf32> to vector<128xf32>
    %52 = vector.shape_cast %51 : vector<128xf32> to vector<1x1x128xf32>
    %53 = vector.broadcast %52 : vector<1x1x128xf32> to vector<8x16x128xf32>
    %54 = arith.mulf %32, %53 : vector<8x16x128xf32>
    %55 = arith.addf %49, %54 : vector<8x16x128xf32>
    %c1_28 = arith.constant 1 : index
    %c0_29 = arith.constant 0 : index
    %c0_30 = arith.constant 0 : index
    %56 = vector.load %arg10[%c1_28, %c0_29, %c0_30] : memref<10x18x128xf32, #tpu.memory_space<vmem>>, vector<8x16x128xf32>
    %c1_31 = arith.constant 1 : index
    %c1_32 = arith.constant 1 : index
    %c0_33 = arith.constant 0 : index
    %57 = vector.load %arg10[%c1_31, %c1_32, %c0_33] : memref<10x18x128xf32, #tpu.memory_space<vmem>>, vector<8x16x128xf32>
    %c1_i32_34 = arith.constant 1 : i32
    %58 = tpu.dynamic_rotate %56 by %c1_i32_34 dim 1 : vector<8x16x128xf32>, i32 -> vector<8x16x128xf32>
    %cst_35 = arith.constant 0.000000e+00 : f32
    %59 = vector.shape_cast %27 : vector<1x16x128xi1> to vector<1x16x128xi1>
    %60 = vector.broadcast %59 : vector<1x16x128xi1> to vector<8x16x128xi1>
    %61 = vector.broadcast %cst_35 : f32 to vector<8x16x128xf32>
    %62 = arith.select %60, %58, %61 : vector<8x16x128xi1>, vector<8x16x128xf32>
    %63 = vector.extract_strided_slice %29 {offsets = [3, 0], sizes = [1, 128], strides = [1, 1]} : vector<9x128xf32> to vector<1x128xf32>
    %64 = vector.shape_cast %63 : vector<1x128xf32> to vector<128xf32>
    %65 = vector.shape_cast %64 : vector<128xf32> to vector<1x1x128xf32>
    %66 = vector.broadcast %65 : vector<1x1x128xf32> to vector<8x16x128xf32>
    %67 = arith.mulf %62, %66 : vector<8x16x128xf32>
    %68 = arith.addf %55, %67 : vector<8x16x128xf32>
    %69 = vector.extract_strided_slice %29 {offsets = [4, 0], sizes = [1, 128], strides = [1, 1]} : vector<9x128xf32> to vector<1x128xf32>
    %70 = vector.shape_cast %69 : vector<1x128xf32> to vector<128xf32>
    %71 = vector.shape_cast %70 : vector<128xf32> to vector<1x1x128xf32>
    %72 = vector.broadcast %71 : vector<1x1x128xf32> to vector<8x16x128xf32>
    %73 = arith.mulf %56, %72 : vector<8x16x128xf32>
    %74 = arith.addf %68, %73 : vector<8x16x128xf32>
    %75 = vector.extract_strided_slice %29 {offsets = [5, 0], sizes = [1, 128], strides = [1, 1]} : vector<9x128xf32> to vector<1x128xf32>
    %76 = vector.shape_cast %75 : vector<1x128xf32> to vector<128xf32>
    %77 = vector.shape_cast %76 : vector<128xf32> to vector<1x1x128xf32>
    %78 = vector.broadcast %77 : vector<1x1x128xf32> to vector<8x16x128xf32>
    %79 = arith.mulf %57, %78 : vector<8x16x128xf32>
    %80 = arith.addf %74, %79 : vector<8x16x128xf32>
    %c2 = arith.constant 2 : index
    %c0_36 = arith.constant 0 : index
    %c0_37 = arith.constant 0 : index
    %81 = vector.load %arg10[%c2, %c0_36, %c0_37] : memref<10x18x128xf32, #tpu.memory_space<vmem>>, vector<8x16x128xf32>
    %c2_38 = arith.constant 2 : index
    %c1_39 = arith.constant 1 : index
    %c0_40 = arith.constant 0 : index
    %82 = vector.load %arg10[%c2_38, %c1_39, %c0_40] : memref<10x18x128xf32, #tpu.memory_space<vmem>>, vector<8x16x128xf32>
    %c1_i32_41 = arith.constant 1 : i32
    %83 = tpu.dynamic_rotate %81 by %c1_i32_41 dim 1 : vector<8x16x128xf32>, i32 -> vector<8x16x128xf32>
    %cst_42 = arith.constant 0.000000e+00 : f32
    %84 = vector.shape_cast %27 : vector<1x16x128xi1> to vector<1x16x128xi1>
    %85 = vector.broadcast %84 : vector<1x16x128xi1> to vector<8x16x128xi1>
    %86 = vector.broadcast %cst_42 : f32 to vector<8x16x128xf32>
    %87 = arith.select %85, %83, %86 : vector<8x16x128xi1>, vector<8x16x128xf32>
    %88 = vector.extract_strided_slice %29 {offsets = [6, 0], sizes = [1, 128], strides = [1, 1]} : vector<9x128xf32> to vector<1x128xf32>
    %89 = vector.shape_cast %88 : vector<1x128xf32> to vector<128xf32>
    %90 = vector.shape_cast %89 : vector<128xf32> to vector<1x1x128xf32>
    %91 = vector.broadcast %90 : vector<1x1x128xf32> to vector<8x16x128xf32>
    %92 = arith.mulf %87, %91 : vector<8x16x128xf32>
    %93 = arith.addf %80, %92 : vector<8x16x128xf32>
    %94 = vector.extract_strided_slice %29 {offsets = [7, 0], sizes = [1, 128], strides = [1, 1]} : vector<9x128xf32> to vector<1x128xf32>
    %95 = vector.shape_cast %94 : vector<1x128xf32> to vector<128xf32>
    %96 = vector.shape_cast %95 : vector<128xf32> to vector<1x1x128xf32>
    %97 = vector.broadcast %96 : vector<1x1x128xf32> to vector<8x16x128xf32>
    %98 = arith.mulf %81, %97 : vector<8x16x128xf32>
    %99 = arith.addf %93, %98 : vector<8x16x128xf32>
    %100 = vector.extract_strided_slice %29 {offsets = [8, 0], sizes = [1, 128], strides = [1, 1]} : vector<9x128xf32> to vector<1x128xf32>
    %101 = vector.shape_cast %100 : vector<1x128xf32> to vector<128xf32>
    %102 = vector.shape_cast %101 : vector<128xf32> to vector<1x1x128xf32>
    %103 = vector.broadcast %102 : vector<1x1x128xf32> to vector<8x16x128xf32>
    %104 = arith.mulf %82, %103 : vector<8x16x128xf32>
    %105 = arith.addf %99, %104 : vector<8x16x128xf32>
    %c0_43 = arith.constant 0 : index
    %c0_44 = arith.constant 0 : index
    %106 = vector.load %arg6[%c0_43, %c0_44] : memref<1x128xf32, #tpu.memory_space<vmem>>, vector<1x128xf32>
    %107 = vector.shape_cast %106 : vector<1x128xf32> to vector<1x1x128xf32>
    %108 = vector.broadcast %107 : vector<1x1x128xf32> to vector<8x16x128xf32>
    %109 = arith.addf %105, %108 : vector<8x16x128xf32>
    %cst_45 = arith.constant 0.000000e+00 : f32
    %cst_46 = arith.constant 6.000000e+00 : f32
    %110 = vector.broadcast %cst_45 : f32 to vector<8x16x128xf32>
    %111 = arith.maximumf %110, %109 : vector<8x16x128xf32>
    %112 = vector.broadcast %cst_46 : f32 to vector<8x16x128xf32>
    %113 = arith.minimumf %112, %111 : vector<8x16x128xf32>
    %114 = vector.shape_cast %113 : vector<8x16x128xf32> to vector<128x128xf32>
    %c0_47 = arith.constant 0 : index
    %c0_48 = arith.constant 0 : index
    %115 = vector.load %arg7[%c0_47, %c0_48] : memref<128x128xf32, #tpu.memory_space<vmem>>, vector<128x128xf32>
    %cst_49 = arith.constant dense<0.000000e+00> : vector<128x128xf32>
    %116 = tpu.matmul %114, %115, %cst_49 {dimension_numbers = #tpu.dot_dimension_numbers<[1], [0], [0], [1], [0, 0, 1, 1], [], []>} : vector<128x128xf32>, vector<128x128xf32>, vector<128x128xf32> -> vector<128x128xf32>
    %117 = arith.addf %28, %116 : vector<128x128xf32>
    %c0_50 = arith.constant 0 : index
    %c0_51 = arith.constant 0 : index
    %118 = vector.load %arg8[%c0_50, %c0_51] : memref<1x128xf32, #tpu.memory_space<vmem>>, vector<1x128xf32>
    %119 = vector.broadcast %118 : vector<1x128xf32> to vector<128x128xf32>
    %120 = arith.addf %117, %119 : vector<128x128xf32>
    %c1_i32_52 = arith.constant 1 : i32
    %121 = arith.addi %1, %c1_i32_52 : i32
    %c0_53 = arith.constant 0 : index
    %122 = arith.index_cast %121 : i32 to index
    %c0_54 = arith.constant 0 : index
    %c0_55 = arith.constant 0 : index
    %123 = vector.load %arg2[%c0_53, %122, %c0_54, %c0_55] : memref<1x18x16x4xf32, #tpu.memory_space<vmem>>, vector<1x8x16x4xf32>
    %124 = vector.shape_cast %123 : vector<1x8x16x4xf32> to vector<8x16x4xf32>
    %125 = vector.shape_cast %124 : vector<8x16x4xf32> to vector<128x4xf32>
    %c0_i32_56 = arith.constant 0 : i32
    %126 = arith.sitofp %c0_i32_56 : i32 to f32
    %127 = vector.broadcast %126 : f32 to vector<128x124xf32>
    %128 = tpu.concatenate %125, %127 in 1 : vector<128x4xf32>, vector<128x124xf32> -> vector<128x128xf32>
    %129 = arith.addf %120, %128 : vector<128x128xf32>
    %130 = vector.shape_cast %129 : vector<128x128xf32> to vector<1x8x16x128xf32>
    %c0_57 = arith.constant 0 : index
    %c0_58 = arith.constant 0 : index
    %c0_59 = arith.constant 0 : index
    %c0_60 = arith.constant 0 : index
    %131 = vector.load %arg9[%c0_57, %c0_58, %c0_59, %c0_60] : memref<1x8x16x128xf32, #tpu.memory_space<vmem>>, vector<1x8x16x128xf32>
    tpu.vector_store %arg9[%c0_57, %c0_58, %c0_59, %c0_60], %130 {strides = array<i32>} : memref<1x8x16x128xf32, #tpu.memory_space<vmem>>, vector<1x8x16x128xf32>,
    return
  }
  func.func @transform_0(%arg0: i32, %arg1: i32) -> (i32, i32, i32, i32) {
    %c0_i32 = arith.constant 0 : i32
    %c0_i32_0 = arith.constant 0 : i32
    %c0_i32_1 = arith.constant 0 : i32
    %c0_i32_2 = arith.constant 0 : i32
    return %arg1, %c0_i32, %c0_i32_0, %c0_i32_1 : i32, i32, i32, i32
  }
  func.func @transform_1(%arg0: i32, %arg1: i32) -> (i32, i32) {
    %c0_i32 = arith.constant 0 : i32
    %c0_i32_0 = arith.constant 0 : i32
    %c0_i32_1 = arith.constant 0 : i32
    return %c0_i32, %c0_i32_0 : i32, i32
  }
  func.func @transform_2(%arg0: i32, %arg1: i32) -> (i32, i32) {
    %c0_i32 = arith.constant 0 : i32
    %c0_i32_0 = arith.constant 0 : i32
    %c0_i32_1 = arith.constant 0 : i32
    return %c0_i32, %c0_i32_0 : i32, i32
  }
  func.func @transform_3(%arg0: i32, %arg1: i32) -> (i32, i32) {
    %c0_i32 = arith.constant 0 : i32
    %c0_i32_0 = arith.constant 0 : i32
    %c0_i32_1 = arith.constant 0 : i32
    return %c0_i32, %c0_i32_0 : i32, i32
  }
  func.func @transform_4(%arg0: i32, %arg1: i32) -> (i32, i32) {
    %c0_i32 = arith.constant 0 : i32
    %c0_i32_0 = arith.constant 0 : i32
    %c0_i32_1 = arith.constant 0 : i32
    return %c0_i32, %c0_i32_0 : i32, i32
  }
  func.func @transform_5(%arg0: i32, %arg1: i32) -> (i32, i32) {
    %c0_i32 = arith.constant 0 : i32
    %c0_i32_0 = arith.constant 0 : i32
    %c0_i32_1 = arith.constant 0 : i32
    return %c0_i32, %c0_i32_0 : i32, i32
  }
  func.func @transform_6(%arg0: i32, %arg1: i32) -> (i32, i32) {
    %c0_i32 = arith.constant 0 : i32
    %c0_i32_0 = arith.constant 0 : i32
    %c0_i32_1 = arith.constant 0 : i32
    return %c0_i32, %c0_i32_0 : i32, i32
  }
  func.func @transform_7(%arg0: i32, %arg1: i32) -> (i32, i32, i32, i32) {
    %c0_i32 = arith.constant 0 : i32
    %c0_i32_0 = arith.constant 0 : i32
    %c0_i32_1 = arith.constant 0 : i32
    return %arg1, %arg0, %c0_i32, %c0_i32_0 : i32, i32, i32, i32
  }
}

</mosaic_0001>

<bundles_post_ra>
// kernel: tpu_custom_call.1
= control target key start
LH: loop header
LB: loop body
LE: loop exit
PB: predicated region body
PF: predicated region fallthrough
CT: control target
= control target key end

     0   :  { %12 = vsyncpa [#allocation4], 0  ;;  %s3012_s0 = inlined_call_operand.vmem [shape: f32[2,18,16,4], index: 0, kind: input, shape index: {}]   ;;  %s3013_s1 = inlined_call_operand.vmem [shape: f32[4,128], index: 1, kind: input, shape index: {}]   ;;  %s3014_s2 = inlined_call_operand.vmem [shape: f32[1,128], index: 2, kind: input, shape index: {}]   ;;  %s3015_s3 = inlined_call_operand.vmem [shape: f32[9,128], index: 3, kind: input, shape index: {}]   ;;  %s3016_s4 = inlined_call_operand.vmem [shape: f32[1,128], index: 4, kind: input, shape index: {}]   ;;  %s3017_s5 = inlined_call_operand.vmem [shape: f32[128,128], index: 5, kind: input, shape index: {}]   ;;  %s3018_s6 = inlined_call_operand.vmem [shape: f32[1,128], index: 6, kind: input, shape index: {}]   ;;  %s3019_s7 = inlined_call_operand.hbm [shape: f32[2,16,16,128], index: 7, kind: output, shape index: {}]  }
   0x1   :  { %14 = vsyncpa [#allocation4 + $0x1], 0  ;;  %s2059_s24 = smov 0   ;;  %s2061_s25 = smov 0  }
   0x2   :  { %s2063_s26 = smov 0   ;;  %s2065_s27 = smov 0  }
   0x3   :  { %s2067_s28 = smov 0   ;;  %s2069_s29 = smov 0  }
   0x4   :  { %s2071_s30 = smov 0   ;;  %s2073_s8 = smov 0  }
   0x5 LB: > { %s1605_s9 = sadd.s32 4294967295, %s2011_s8   ;;  %s1606_s10 = sadd.s32 4294967294, %s2011_s8   ;;  %s2011_s8 = sphi %s2073_s8, %s20_s8   ;;  %s2007_s30 = sphi %s2071_s30, %s3071_s30   ;;  %s2003_s29 = sphi %s2069_s29, %s3070_s29   ;;  %s1999_s28 = sphi %s2067_s28, %s3069_s28   ;;  %s1995_s27 = sphi %s2065_s27, %s3068_s27   ;;  %s1991_s26 = sphi %s2063_s26, %s3067_s26   ;;  %s1987_s25 = sphi %s2061_s25, %s3066_s25   ;;  %s1983_s24 = sphi %s2059_s24, %s3065_s24  }
   0x6   : > { %s29_s11 = sadd.s32 1, %s2003_s29  ;;  %s32_s12 = sadd.s32 1, %s2007_s30 }
   0x7   : > { %p30_p0 = scmp.ge.s32.totalorder %s29_s11, 2  ;;  %p203_p1 = scmp.ne.s32.totalorder %s1991_s26, %s1987_s25 }
   0x8   : > { %p204_p2 = scmp.eq.s32.totalorder %s1605_s9, 3  ;;  %p209_p5 = scmp.ne.s32.totalorder %s1987_s25, %s1983_s24 }
   0x9   : > { %s3073_s11 = smov (%p30_p0, %s29_s11), 0  ;;  %s3075_s12 = smov (!%p30_p0, %s32_s12), %s2007_s30 }
   0xa   : > { %s188_s13 = ssub.s32 %s2003_s29, %s3073_s11  ;;  %p2110_p3 = por %p204_p2, %p203_p1 }
   0xb   : > { %p34_p4 = scmp.ge.s32.totalorder %s3075_s12, 2  ;;  %p210_p6 = scmp.eq.s32.totalorder %s1606_s10, 3 }
   0xc   : > { %p1609_p7 = scmp.ge.s32.totalorder %s2011_s8, 1  ;;  %p254_p9 = scmp.lt.s32.totalorder %s2011_s8, 5 }
   0xd   : > { %s3077_s12 = smov (%p34_p4, %s3075_s12), 0  ;;  %p2119_p8 = por %p210_p6, %p209_p5 }
   0xe   : > { %3032 = sst [smem:[#allocation6_spill]] %s3077_s12  ;;  %s189_s16 = ssub.s32 %s2007_s30, %s3077_s12 }
   0xf   : > { %s193_s17 = sadd.s32 1, %s1991_s26  ;;  %s190_s18 = sor.u32 %s189_s16, %s188_s13 }
  0x10   : > { %p255_p10 = pnand %p1609_p7, %p254_p9  ;;  %p191_p11 = scmp.eq.s32.totalorder %s190_s18, 0 }
  0x12   : > { %s2128_s19 = scalar_select %p191_p11, %s1991_s26, %s193_s17  }
  0x13   : > { %258 = sbr.rel (%p255_p10) target bundleno = 616 (0x268), region = 48 }
  0x18   : > { %s283_s20 = sand.u32 1, %s1987_s25   ;;  %v315_v0 = vld [vmem:[%s3013_s1] sm:$0xf]  ;;  %vm384_vm0 = vcmask 1043456   ;;  %p286_p12 = scmp.lt.s32.totalorder %s1995_s27, 1  ;;  %vm323_vm1 = vcmask 31744  }
  0x19   : > { %s2137_s9 = sshll.u32 %s283_s20, 7  ;;  %1722 = vmatprep.subr.msk.mxu0 %vm384_vm0, %v315_v0  ;;  %s1666_s16 = sshll.u32 %s1999_s28, 7  ;;  %v2013_v21 = vmov 0.0   ;;  %v2190_v22 = vld [vmem:[%s3014_s2] ss:$0 sm:$0xff] }
  0x1a   : > { %1723 = vmatpush3.msk.msra.mxu0 %vm384_vm0, %v315_v0  ;;  %s287_s10 = scalar_select %p286_p12, %s1995_s27, 1  ;;  %613 = vst [vmem:[#allocation2 + $0x10] sm:$0x3] %v2013_v21  ;;  %614 = vst [vmem:[#allocation2 + $0x28] sm:$0x3] %v2013_v21 }
  0x1b   : > { %615 = vst [vmem:[#allocation2 + $0x40] sm:$0x3] %v2013_v21  ;;  %616 = vst [vmem:[#allocation2 + $0x58] sm:$0x3] %v2013_v21  ;;  %s2213_s23 = scalar_lea.vmem [#allocation3], %s2137_s9 }
  0x1c   : > { %s1842_s13 = smul.u32 288, %s287_s10  ;;  %617 = vst [vmem:[#allocation2 + $0x70] sm:$0x3] %v2013_v21  ;;  %618 = vst [vmem:[#allocation2 + $0x88] sm:$0x3] %v2013_v21  ;;  %s3034_s10 = sshll.u32 %s1999_s28, 3 }
  0x1d   : > { %619 = vst [vmem:[#allocation2 + $0xa0] sm:$0x3] %v2013_v21  ;;  %620 = vst [vmem:[#allocation2 + $0xb8] sm:$0x3] %v2013_v21  ;;  %p1636_p13 = scmp.ne.s32.totalorder %s3034_s10, 0 }
  0x1e   : > { %s290_s12 = scalar_lea.vmem %s3012_s0, %s1842_s13  ;;  %621 = vst [vmem:[#allocation2 + $0xd0] sm:$0x3] %v2013_v21  ;;  %622 = vst [vmem:[#allocation2 + $0xe8] sm:$0x3] %v2013_v21 }
  0x1f   : > { %s2145_s21 = scalar_lea.vmem %s290_s12, %s1666_s16 }
  0x20   : > { %v295_v1 = vld [vmem:[%s2145_s21] sm:$0xff]  ;;  %v296_v2 = vld [vmem:[%s2145_s21 + $0x8] sm:$0xff]  ;;  %v297_v3 = vld [vmem:[%s2145_s21 + $0x10] sm:$0xff] }
  0x21   : > { %1724 = vmatprep.mubr.msk.f32.mxu0 %vm323_vm1, %v295_v1  ;;  %v298_v4 = vld [vmem:[%s2145_s21 + $0x18] sm:$0xff]  ;;  %v299_v5 = vld [vmem:[%s2145_s21 + $0x20] sm:$0xff]  ;;  %v300_v6 = vld [vmem:[%s2145_s21 + $0x28] sm:$0xff] }
  0x22   : > { %1725 = vmatmul.mubr.msk.f32.vlgmr.msra.gmra.mxu0 %vm323_vm1, %v296_v2  ;;  %v301_v7 = vld [vmem:[%s2145_s21 + $0x30] sm:$0xff]  ;;  %v302_v8 = vld [vmem:[%s2145_s21 + $0x38] sm:$0xff]  ;;  %v303_v9 = vld [vmem:[%s2145_s21 + $0x40] sm:$0xff] }
  0x23   : > { %1727 = vmatprep.mubr.msk.f32.mxu0 %vm323_vm1, %v297_v3  ;;  %v304_v10 = vld [vmem:[%s2145_s21 + $0x48] sm:$0xff]  ;;  %v305_v11 = vld [vmem:[%s2145_s21 + $0x50] sm:$0xff]  ;;  %v306_v12 = vld [vmem:[%s2145_s21 + $0x58] sm:$0xff] }
  0x24   : > { %v307_v13 = vld [vmem:[%s2145_s21 + $0x60] sm:$0xff]  ;;  %v308_v14 = vld [vmem:[%s2145_s21 + $0x68] sm:$0xff]  ;;  %v309_v15 = vld [vmem:[%s2145_s21 + $0x70] sm:$0xff] }
  0x25   : > { %v310_v16 = vld [vmem:[%s2145_s21 + $0x78] sm:$0xff]  ;;  %v311_v17 = vld [vmem:[%s2145_s21 + $0x80] sm:$0xff]  ;;  %v312_v18 = vld [vmem:[%s2145_s21 + $0x88] sm:$0xff] }
  0x26   : > { %1728 = vmatmul.mubr.msk.f32.gmra.mxu0 %vm323_vm1, %v298_v4  ;;  %v313_v19 = vld [vmem:[%s2145_s21 + $0x90] sm:$0xff]  ;;  %v314_v20 = vld [vmem:[%s2145_s21 + $0x98] sm:$0xff] }
  0x27   : > { %1730 = vmatprep.mubr.msk.f32.mxu0 %vm323_vm1, %v299_v5 }
  0x2a   : > { %1731 = vmatmul.mubr.msk.f32.gmra.mxu0 %vm323_vm1, %v300_v6 }
  0x2b   : > { %1733 = vmatprep.mubr.msk.f32.mxu0 %vm323_vm1, %v301_v7 }
  0x2e   : > { %1734 = vmatmul.mubr.msk.f32.gmra.mxu0 %vm323_vm1, %v302_v8 }
  0x2f   : > { %1736 = vmatprep.mubr.msk.f32.mxu0 %vm323_vm1, %v303_v9 }
  0x32   : > { %1737 = vmatmul.mubr.msk.f32.gmra.mxu0 %vm323_vm1, %v304_v10 }
  0x33   : > { %1739 = vmatprep.mubr.msk.f32.mxu0 %vm323_vm1, %v305_v11 }
  0x36   : > { %1740 = vmatmul.mubr.msk.f32.gmra.mxu0 %vm323_vm1, %v306_v12 }
  0x37   : > { %1742 = vmatprep.mubr.msk.f32.mxu0 %vm323_vm1, %v307_v13 }
  0x3a   : > { %1743 = vmatmul.mubr.msk.f32.gmra.mxu0 %vm323_vm1, %v308_v14 }
  0x3b   : > { %1745 = vmatprep.mubr.msk.f32.mxu0 %vm323_vm1, %v309_v15 }
  0x3e   : > { %1746 = vmatmul.mubr.msk.f32.gmra.mxu0 %vm323_vm1, %v310_v16 }
  0x3f   : > { %1748 = vmatprep.mubr.msk.f32.mxu0 %vm323_vm1, %v311_v17 }
  0x42   : > { %1749 = vmatmul.mubr.msk.f32.gmra.mxu0 %vm323_vm1, %v312_v18 }
  0x43   : > { %1751 = vmatprep.mubr.msk.f32.mxu0 %vm323_vm1, %v313_v19 }
  0x46   : > { %1752 = vmatmul.mubr.msk.f32.gmra.mxu0 %vm323_vm1, %v314_v20 }
  0xe2   : > { %v1726_v23 = vpop.f32.mrf.mxu0 }
  0xe3   : > { %v460_v24 = vadd.f32 %v1726_v23, %v2190_v22 }
  0xe4   : > { %v454_v25 = vpop.f32.mrf.mxu0 }
  0xe5   : > { %v554_v26 = vmax.f32 %v460_v24, 0.0  ;;  %v455_v27 = vadd.f32 %v2190_v22, %v454_v25 }
  0xe6   : > { %v1729_v28 = vpop.f32.mrf.mxu0 }
  0xe7   : > { %v574_v29 = vmin.f32 %v554_v26, 6.0  ;;  %v553_v30 = vmax.f32 %v455_v27, 0.0  ;;  %v470_v31 = vadd.f32 %v1729_v28, %v2190_v22 }
  0xe8   : > { %v464_v32 = vpop.f32.mrf.mxu0 }
  0xe9   : > { %594 = vst [vmem:[#allocation2 + $0x8] sm:$0xff] %v574_v29  ;;  %v573_v33 = vmin.f32 %v553_v30, 6.0  ;;  %v556_v34 = vmax.f32 %v470_v31, 0.0  ;;  %v465_v35 = vadd.f32 %v2190_v22, %v464_v32 }
  0xea   : > { %v1732_v36 = vpop.f32.mrf.mxu0 }
  0xeb   : > { %593 = vst [vmem:[#allocation2] sm:$0xff] %v573_v33  ;;  %v576_v37 = vmin.f32 %v556_v34, 6.0  ;;  %v555_v38 = vmax.f32 %v465_v35, 0.0  ;;  %v480_v39 = vadd.f32 %v1732_v36, %v2190_v22 }
  0xec   : > { %v474_v40 = vpop.f32.mrf.mxu0 }
  0xed   : > { %596 = vst [vmem:[#allocation2 + $0x20] sm:$0xff] %v576_v37  ;;  %v575_v41 = vmin.f32 %v555_v38, 6.0  ;;  %v558_v42 = vmax.f32 %v480_v39, 0.0  ;;  %v475_v43 = vadd.f32 %v2190_v22, %v474_v40 }
  0xee   : > { %v1735_v44 = vpop.f32.mrf.mxu0 }
  0xef   : > { %595 = vst [vmem:[#allocation2 + $0x18] sm:$0xff] %v575_v41  ;;  %v578_v45 = vmin.f32 %v558_v42, 6.0  ;;  %v557_v46 = vmax.f32 %v475_v43, 0.0  ;;  %v490_v47 = vadd.f32 %v1735_v44, %v2190_v22 }
  0xf0   : > { %v484_v48 = vpop.f32.mrf.mxu0 }
  0xf1   : > { %598 = vst [vmem:[#allocation2 + $0x38] sm:$0xff] %v578_v45  ;;  %v577_v49 = vmin.f32 %v557_v46, 6.0  ;;  %v560_v50 = vmax.f32 %v490_v47, 0.0  ;;  %v485_v51 = vadd.f32 %v2190_v22, %v484_v48 }
  0xf2   : > { %v1738_v52 = vpop.f32.mrf.mxu0 }
  0xf3   : > { %597 = vst [vmem:[#allocation2 + $0x30] sm:$0xff] %v577_v49  ;;  %v580_v53 = vmin.f32 %v560_v50, 6.0  ;;  %v559_v54 = vmax.f32 %v485_v51, 0.0  ;;  %v500_v55 = vadd.f32 %v1738_v52, %v2190_v22 }
  0xf4   : > { %v494_v56 = vpop.f32.mrf.mxu0 }
  0xf5   : > { %600 = vst [vmem:[#allocation2 + $0x50] sm:$0xff] %v580_v53  ;;  %v579_v57 = vmin.f32 %v559_v54, 6.0  ;;  %v562_v58 = vmax.f32 %v500_v55, 0.0  ;;  %v495_v59 = vadd.f32 %v2190_v22, %v494_v56 }
  0xf6   : > { %v1741_v60 = vpop.f32.mrf.mxu0 }
  0xf7   : > { %599 = vst [vmem:[#allocation2 + $0x48] sm:$0xff] %v579_v57  ;;  %v582_v61 = vmin.f32 %v562_v58, 6.0  ;;  %v561_v62 = vmax.f32 %v495_v59, 0.0  ;;  %v510_v63 = vadd.f32 %v1741_v60, %v2190_v22 }
  0xf8   : > { %v504_v0 = vpop.f32.mrf.mxu0 }
  0xf9   : > { %602 = vst [vmem:[#allocation2 + $0x68] sm:$0xff] %v582_v61  ;;  %v581_v1 = vmin.f32 %v561_v62, 6.0  ;;  %v564_v2 = vmax.f32 %v510_v63, 0.0  ;;  %v505_v3 = vadd.f32 %v2190_v22, %v504_v0 }
  0xfa   : > { %v1744_v4 = vpop.f32.mrf.mxu0 }
  0xfb   : > { %601 = vst [vmem:[#allocation2 + $0x60] sm:$0xff] %v581_v1  ;;  %v584_v5 = vmin.f32 %v564_v2, 6.0  ;;  %v563_v6 = vmax.f32 %v505_v3, 0.0  ;;  %v520_v7 = vadd.f32 %v1744_v4, %v2190_v22 }
  0xfc   : > { %v514_v8 = vpop.f32.mrf.mxu0 }
  0xfd   : > { %604 = vst [vmem:[#allocation2 + $0x80] sm:$0xff] %v584_v5  ;;  %v583_v9 = vmin.f32 %v563_v6, 6.0  ;;  %v566_v10 = vmax.f32 %v520_v7, 0.0  ;;  %v515_v11 = vadd.f32 %v2190_v22, %v514_v8 }
  0xfe   : > { %v1747_v12 = vpop.f32.mrf.mxu0 }
  0xff   : > { %603 = vst [vmem:[#allocation2 + $0x78] sm:$0xff] %v583_v9  ;;  %v586_v13 = vmin.f32 %v566_v10, 6.0  ;;  %v565_v14 = vmax.f32 %v515_v11, 0.0  ;;  %v530_v15 = vadd.f32 %v1747_v12, %v2190_v22 }
 0x100   : > { %v524_v16 = vpop.f32.mrf.mxu0 }
 0x101   : > { %606 = vst [vmem:[#allocation2 + $0x98] sm:$0xff] %v586_v13  ;;  %v585_v17 = vmin.f32 %v565_v14, 6.0  ;;  %v568_v18 = vmax.f32 %v530_v15, 0.0  ;;  %v525_v19 = vadd.f32 %v2190_v22, %v524_v16 }
 0x102   : > { %v1750_v20 = vpop.f32.mrf.mxu0 }
 0x103   : > { %605 = vst [vmem:[#allocation2 + $0x90] sm:$0xff] %v585_v17  ;;  %v588_v21 = vmin.f32 %v568_v18, 6.0  ;;  %v567_v23 = vmax.f32 %v525_v19, 0.0  ;;  %v540_v24 = vadd.f32 %v1750_v20, %v2190_v22 }
 0x104   : > { %v534_v25 = vpop.f32.mrf.mxu0 }
 0x105   : > { %608 = vst [vmem:[#allocation2 + $0xb0] sm:$0xff] %v588_v21  ;;  %v587_v26 = vmin.f32 %v567_v23, 6.0  ;;  %v570_v27 = vmax.f32 %v540_v24, 0.0  ;;  %v535_v28 = vadd.f32 %v2190_v22, %v534_v25 }
 0x106   : > { %v1753_v29 = vpop.f32.mrf.mxu0 }
 0x107   : > { %607 = vst [vmem:[#allocation2 + $0xa8] sm:$0xff] %v587_v26  ;;  %v590_v30 = vmin.f32 %v570_v27, 6.0  ;;  %v569_v31 = vmax.f32 %v535_v28, 0.0  ;;  %v550_v32 = vadd.f32 %v1753_v29, %v2190_v22 }
 0x108   : > { %v544_v33 = vpop.f32.mrf.mxu0 }
 0x109   : > { %610 = vst [vmem:[#allocation2 + $0xc8] sm:$0xff] %v590_v30  ;;  %v589_v34 = vmin.f32 %v569_v31, 6.0  ;;  %v572_v35 = vmax.f32 %v550_v32, 0.0  ;;  %v545_v36 = vadd.f32 %v2190_v22, %v544_v33 }
 0x10b   : > { %609 = vst [vmem:[#allocation2 + $0xc0] sm:$0xff] %v589_v34  ;;  %v592_v37 = vmin.f32 %v572_v35, 6.0  ;;  %v571_v38 = vmax.f32 %v545_v36, 0.0  ;;  %626 = sbr.rel (%p1636_p13) target bundleno = 275 (0x113), region = 52 }
 0x10d   : > { %612 = vst [vmem:[#allocation2 + $0xe0] sm:$0xff] %v592_v37  ;;  %v591_v39 = vmin.f32 %v571_v38, 6.0 }
 0x10f   : > { %611 = vst [vmem:[#allocation2 + $0xd8] sm:$0xff] %v591_v39 }
 0x110   : > { %v2014_v40 = vmov 0.0  }
 0x111   : > { %627 = vst [vmem:[#allocation2] sm:$0xff] %v2014_v40  ;;  %628 = vst [vmem:[#allocation2 + $0x8] sm:$0xff] %v2014_v40 }
 0x112   : > { %629 = vst [vmem:[#allocation2 + $0x10] sm:$0x3] %v2014_v40 }
 0x113 PF: > { %s3035_s13 = sshll.u32 %s1999_s28, 3 }
 0x114   : > { %p1637_p0 = scmp.ne.s32.totalorder %s3035_s13, 8 }
 0x116   : > { %633 = sbr.rel (%p1637_p0) target bundleno = 286 (0x11e), region = 56 }
 0x11b   : > { %v2015_v22 = vmov 0.0  }
 0x11c   : > { %635 = vst [vmem:[#allocation2 + $0xd8] sm:$0xff] %v2015_v22  ;;  %636 = vst [vmem:[#allocation2 + $0xe0] sm:$0xff] %v2015_v22 }
 0x11d   : > { %637 = vst [vmem:[#allocation2 + $0xe8] sm:$0x3] %v2015_v22 }
 0x11e PF: > { %v1286_v41 = vld [vmem:[%s3017_s5 + $0x78] sm:$0xff]  ;;  %v1285_v42 = vld [vmem:[%s3017_s5 + $0x70] sm:$0xff]  ;;  %v638_v43 = vlaneseq  ;;  %v1284_v44 = vld [vmem:[%s3017_s5 + $0x68] sm:$0xff]  ;;  %s1668_s9 = sshll.u32 %s1999_s28, 4  ;;  %s1662_s16 = sshll.u32 %s1995_s27, 5 }
 0x11f   : > { %1810 = vmatprep.subr.mxu1 %v1286_v41  ;;  %1754 = vmatprep.subr.mxu0 %v1286_v41  ;;  %v1283_v46 = vld [vmem:[%s3017_s5 + $0x60] sm:$0xff]  ;;  %v1282_v48 = vld [vmem:[%s3017_s5 + $0x58] sm:$0xff]  ;;  %v2246_v52 = vld [vmem:[#allocation2 + $0x30] sm:$0xff]  ;;  %s1520_s17 = sadd.s32 %s1668_s9, %s1662_s16  ;;  %s1523_s12 = sshll.u32 %s2213_s23, 4  ;;  %s2955_s12 = int_to_ptr.vmem [resolvable:$true] %s1523_s12 }
 0x120   : > { %1826 = vmatpush3.msra.mxu1 %v1286_v41  ;;  %1755 = vmatpush3.msra.mxu0 %v1286_v41  ;;  %v2228_v45 = vshrl.u32 %v638_v43, 7  ;;  %v2241_v49 = vld [vmem:[%s3015_s3] sm:$0xff]  ;;  %v2248_v53 = vld [vmem:[#allocation2 + $0x38] sm:$0xff]  ;;  %v679_v59 = vrot.slane %v2246_v52, 7  ;;  %v2266_v63 = vld [vmem:[#allocation2 + $0x48] sm:$0xff]  ;;  %s1663_s18 = sshll.u32 %s1520_s17, 7 }
 0x121   : > { %1811 = vmatprep.subr.mxu1 %v1285_v42  ;;  %1756 = vmatprep.subr.mxu0 %v1285_v42  ;;  %v2250_v54 = vld [vmem:[#allocation2 + $0x31] sm:$0xff]  ;;  %v687_v60 = vrot.slane %v2248_v53, 7  ;;  %3036 = vst [vmem:[#allocation7_spill] sm:$0xff] %v2266_v63  ;;  %v873_v2 = vrot.slane %v2266_v63, 7  ;;  %v2281_v6 = vld [vmem:[#allocation2 + $0x60] sm:$0xff]  ;;  %v2283_v7 = vld [vmem:[#allocation2 + $0x68] sm:$0xff]  ;;  %s2953_s22 = scalar_lea.hbm %s3019_s7, %s1663_s18 }
 0x122   : > { %1827 = vmatpush3.msra.mxu1 %v1285_v42  ;;  %1757 = vmatpush3.msra.mxu0 %v1285_v42  ;;  %v732_v47 = vsub.s32 0, %v2228_v45  ;;  %vm641_vm2 = vcmp.gt.s32.totalorder %v2228_v45, 0  ;;  %vm693_vm3 = vcmp.lt.s32.totalorder %v2228_v45, 1  ;;  %v768_v50 = vsub.s32 1, %v2228_v45  ;;  %v2268_v0 = vld [vmem:[#allocation2 + $0x50] sm:$0xff]  ;;  %v1280_v13 = vld [vmem:[%s3017_s5 + $0x48] sm:$0xff] }
 0x123   : > { %1812 = vmatprep.subr.mxu1 %v1284_v44  ;;  %1758 = vmatprep.subr.mxu0 %v1284_v44  ;;  %v804_v51 = vsub.s32 2, %v2228_v45  ;;  %v921_v56 = vsub.s32 3, %v2228_v45  ;;  %v957_v57 = vsub.s32 4, %v2228_v45  ;;  %v993_v58 = vsub.s32 5, %v2228_v45  ;;  %3037 = vst [vmem:[#allocation8_spill] sm:$0xff] %v2268_v0  ;;  %v1281_v1 = vld [vmem:[%s3017_s5 + $0x50] sm:$0xff] }
 0x124   : > { %1828 = vmatpush3.msra.mxu1 %v1284_v44  ;;  %1759 = vmatpush3.msra.mxu0 %v1284_v44  ;;  %v2253_v55 = vrot.slane %v2241_v49, %v732_v47  ;;  %v2261_v61 = vrot.slane %v2241_v49, %v768_v50  ;;  %v881_v3 = vrot.slane %v2268_v0, 7  ;;  %v2288_v8 = vld [vmem:[%s3015_s3 + $0x8] ss:$0 sm:$0xff]  ;;  %v704_v9 = vsel %vm693_vm3, %v687_v60, %v679_v59  ;;  %v1279_v24 = vld [vmem:[%s3017_s5 + $0x40] sm:$0xff]  ;;  %v2329_v25 = vld [vmem:[#allocation2 + $0x49] sm:$0xff]  ;;  %s1919_s10 = scalar_lea.vmem %s2955_s12, 2048 }
 0x125   : > { %1813 = vmatprep.subr.mxu1 %v1283_v46  ;;  %1760 = vmatprep.subr.mxu0 %v1283_v46  ;;  %v2264_v62 = vrot.slane %v2241_v49, %v804_v51  ;;  %v2276_v4 = vrot.slane %v2241_v49, %v921_v56  ;;  %v2279_v5 = vrot.slane %v2241_v49, %v957_v57  ;;  %v1062_v12 = vrot.slane %v2281_v6, 7  ;;  %v2323_v21 = vld [vmem:[#allocation2 + $0x61] sm:$0xff]  ;;  %v2345_v33 = vld [vmem:[#allocation2 + $0x78] sm:$0xff]  ;;  %v2374_v43 = vld [vmem:[#allocation2 + $0x90] sm:$0xff]  ;;  %p1920_p1 = scmp.ne.s32.totalorder %s2955_s12, %s1919_s10  ;;  %s2016_s13 = smov [#allocation3]  }
 0x126   : > { %1829 = vmatpush3.msra.mxu1 %v1283_v46  ;;  %1761 = vmatpush3.msra.mxu0 %v1283_v46  ;;  %v774_v10 = vmul.f32 %v2261_v61, %v2246_v52  ;;  %v2304_v14 = vsel %vm641_vm2, %v704_v9, 0.0  ;;  %v2308_v15 = vsel %vm693_vm3, %v873_v2, %v881_v3  ;;  %v897_v16 = vsel %vm693_vm3, %v881_v3, %v873_v2  ;;  %v1278_v34 = vld [vmem:[%s3017_s5 + $0x38] sm:$0xff]  ;;  %v2360_v39 = vld [vmem:[#allocation2 + $0x80] sm:$0xff]  ;;  %v1277_v44 = vld [vmem:[%s3017_s5 + $0x30] sm:$0xff]  ;;  %s1923_s9 = sshll.u32 %s2016_s13, 4  ;;  %s1924_s9 = int_to_ptr.vmem [resolvable:$false] %s1923_s9 }
 0x127   : > { %1814 = vmatprep.subr.mxu1 %v1282_v48  ;;  %1762 = vmatprep.subr.mxu0 %v1282_v48  ;;  %v810_v11 = vmul.f32 %v2264_v62, %v2250_v54  ;;  %3038 = vst [vmem:[#allocation9_spill] sm:$0xff] %v2308_v15  ;;  %v963_v17 = vmul.f32 %v2279_v5, %v2266_v63  ;;  %v2318_v19 = vsel %vm641_vm2, %v897_v16, 0.0  ;;  %v1070_v23 = vrot.slane %v2283_v7, 7  ;;  %v2358_v38 = vld [vmem:[#allocation2 + $0x39] sm:$0xff]  ;;  %v2392_v57 = vld [vmem:[#allocation2 + $0x51] sm:$0xff]  ;;  %p1921_p2 = pnand %p1920_p1, %p2110_p3  ;;  %s1925_s16 = scalar_lea.vmem %s1924_s9, 4096 }
 0x128   : > { %1830 = vmatpush3.msra.mxu1 %v1282_v48  ;;  %1763 = vmatpush3.msra.mxu0 %v1282_v48  ;;  %v738_v18 = vmul.f32 %v2253_v55, %v2304_v14  ;;  %3039 = vst [vmem:[#allocation10_spill] sm:$0xff] %v2318_v19  ;;  %v2321_v20 = vrot.slane %v2241_v49, %v993_v58  ;;  %3040 = vst [vmem:[#allocation11_spill] sm:$0xff] %v2329_v25  ;;  %v1110_v27 = vsub.s32 6, %v2228_v45  ;;  %v2388_v50 = vld [vmem:[#allocation2 + $0x98] sm:$0xff]  ;;  %p1926_p5 = scmp.lt.s32.totalorder %s2955_s12, %s1924_s9  ;;  %p1927_p6 = scmp.lt.s32.totalorder %s1925_s16, %s1919_s10 }
 0x129   : > { %1815 = vmatprep.subr.mxu1 %v1281_v1  ;;  %1764 = vmatprep.subr.mxu0 %v1281_v1  ;;  %v927_v26 = vmul.f32 %v2276_v4, %v2318_v19  ;;  %v1146_v28 = vsub.s32 7, %v2228_v45  ;;  %v2337_v29 = vmul.f32 %v2288_v8, %v2323_v21  ;;  %v2343_v32 = vsel %vm693_vm3, %v1062_v12, %v1070_v23  ;;  %p1922_p4 = pneg %p1921_p2 }
 0x12a   : > { %1831 = vmatpush3.msra.mxu1 %v1281_v1  ;;  %1765 = vmatpush3.msra.mxu0 %v1281_v1  ;;  %v790_v30 = vadd.f32 %v774_v10, %v738_v18  ;;  %v999_v31 = vmul.f32 %v2321_v20, %v2329_v25  ;;  %v1086_v35 = vsel %vm693_vm3, %v1070_v23, %v1062_v12  ;;  %v1276_v1 = vld [vmem:[%s3017_s5 + $0x28] sm:$0xff]  ;;  %v2493_v23 = vld [vmem:[%s3016_s4] ss:$0 sm:$0xff]  ;;  %p1928_p7 = por %p1927_p6, %p1926_p5 }
 0x12b   : > { %1816 = vmatprep.subr.mxu1 %v1280_v13  ;;  %1766 = vmatprep.subr.mxu0 %v1280_v13  ;;  %v2353_v36 = vrot.slane %v2241_v49, %v1110_v27  ;;  %v2356_v37 = vrot.slane %v2241_v49, %v1146_v28  ;;  %3041 = vst [vmem:[#allocation12_spill] sm:$0xff] %v2358_v38  ;;  %v2364_v22 = vsel %vm641_vm2, %v1086_v35, 0.0  ;;  %v3021_v49 = vrot.slane %v2345_v33, 7 }
 0x12c   : > { %1832 = vmatpush3.msra.mxu1 %v1280_v13  ;;  %1767 = vmatpush3.msra.mxu0 %v1280_v13  ;;  %v826_v40 = vadd.f32 %v810_v11, %v790_v30  ;;  %v2370_v41 = vsel %vm693_vm3, %v679_v59, %v687_v60  ;;  %v775_v42 = vmul.f32 %v2261_v61, %v2248_v53  ;;  %v3022_v59 = vrot.slane %v2360_v39, 7  ;;  %v2397_v60 = vld [vmem:[#allocation2 + $0xa8] sm:$0xff]  ;;  %v2407_v11 = vld [vmem:[#allocation2 + $0xb0] sm:$0xff]  ;;  %p1929_p9 = pnand %p1928_p7, %p1922_p4 }
 0x12d   : > { %1817 = vmatprep.subr.mxu1 %v1279_v24  ;;  %1768 = vmatprep.subr.mxu0 %v1279_v24  ;;  %v1116_v46 = vmul.f32 %v2353_v36, %v2364_v22  ;;  %v2383_v47 = vmul.f32 %v2356_v37, %v2281_v6  ;;  %v739_v48 = vmul.f32 %v2253_v55, %v2370_v41  ;;  %v2409_v13 = vld [vmem:[#allocation2 + $0x69] sm:$0xff] }
 0x12e   : > { %1833 = vmatpush3.msra.mxu1 %v1279_v24  ;;  %1769 = vmatpush3.msra.mxu0 %v1279_v24  ;;  %v943_v51 = vadd.f32 %v927_v26, %v826_v40  ;;  %v811_v56 = vmul.f32 %v2264_v62, %v2358_v38  ;;  %3042 = vst [vmem:[#allocation13_spill] sm:$0xff] %v2392_v57  ;;  %v2418_v24 = vld [vmem:[#allocation2] sm:$0xff]  ;;  %v2420_v26 = vld [vmem:[#allocation2 + $0x8] sm:$0xff] }
 0x12f   : > { %1818 = vmatprep.subr.mxu1 %v1278_v34  ;;  %1770 = vmatprep.subr.mxu0 %v1278_v34  ;;  %v928_v58 = vmul.f32 %v2276_v4, %v2308_v15  ;;  %v791_v2 = vadd.f32 %v775_v42, %v739_v48  ;;  %v964_v3 = vmul.f32 %v2279_v5, %v2268_v0 }
 0x130   : > { %1834 = vmatpush3.msra.mxu1 %v1278_v34  ;;  %1771 = vmatpush3.msra.mxu0 %v1278_v34  ;;  %v1000_v9 = vmul.f32 %v2321_v20, %v2392_v57  ;;  %v979_v12 = vadd.f32 %v963_v17, %v943_v51  ;;  %v1117_v16 = vmul.f32 %v2353_v36, %v2343_v32  ;;  %v2425_v17 = vld [vmem:[%s3017_s5 + $0x20] sm:$0xff] }
 0x131   : > { %1819 = vmatprep.subr.mxu1 %v1277_v44  ;;  %1772 = vmatprep.subr.mxu0 %v1277_v44  ;;  %v2415_v18 = vmul.f32 %v2356_v37, %v2283_v7  ;;  %v827_v27 = vadd.f32 %v811_v56, %v791_v2  ;;  %v2429_v28 = vmul.f32 %v2288_v8, %v2409_v13 }
 0x132   : > { %1835 = vmatpush3.msra.mxu1 %v1277_v44  ;;  %1773 = vmatpush3.msra.mxu0 %v1277_v44  ;;  %v740_v30 = vmul.f32 %v2318_v19, %v2253_v55  ;;  %v1015_v35 = vadd.f32 %v999_v31, %v979_v12  ;;  %v776_v40 = vmul.f32 %v2266_v63, %v2261_v61  ;;  %v2442_v44 = vld [vmem:[%s3017_s5 + $0x18] sm:$0xff] }
 0x133   : > { %1820 = vmatprep.subr.mxu1 %v1276_v1  ;;  %1774 = vmatprep.subr.mxu0 %v1276_v1  ;;  %v812_v42 = vmul.f32 %v2329_v25, %v2264_v62  ;;  %v944_v51 = vadd.f32 %v928_v58, %v827_v27  ;;  %v929_v31 = vmul.f32 %v2364_v22, %v2276_v4 }
 0x134   : > { %1836 = vmatpush3.msra.mxu1 %v1276_v1  ;;  %1775 = vmatpush3.msra.mxu0 %v1276_v1  ;;  %v1132_v12 = vadd.f32 %v1116_v46, %v1015_v35  ;;  %v792_v34 = vadd.f32 %v776_v40, %v740_v30  ;;  %v965_v48 = vmul.f32 %v2281_v6, %v2279_v5  ;;  %v2461_v1 = vld [vmem:[%s3017_s5 + $0x10] sm:$0xff]  ;;  %v2465_v30 = vld [vmem:[#allocation2 + $0x79] sm:$0xff] }
 0x135   : > { %1821 = vmatprep.subr.mxu1 %v2425_v17  ;;  %v1087_v58 = vsel %vm693_vm3, %v3022_v59, %v3021_v49  ;;  %v980_v27 = vadd.f32 %v964_v3, %v944_v51  ;;  %v1001_v46 = vmul.f32 %v2323_v21, %v2321_v20  ;;  %v2473_v40 = vmul.f32 %v2356_v37, %v2345_v33 }
 0x136   : > { %1837 = vmatpush3.msra.mxu1 %v2425_v17  ;;  %v2469_v35 = vsel %vm641_vm2, %v1087_v58, 0.0  ;;  %1776 = vmatprep.subr.mxu0 %v2425_v17  ;;  %v1168_v2 = vadd.f32 %v2383_v47, %v1132_v12  ;;  %v828_v3 = vadd.f32 %v812_v42, %v792_v34  ;;  %v2480_v51 = vmul.f32 %v2288_v8, %v2465_v30  ;;  %v2488_v58 = vld [vmem:[%s3017_s5 + $0x8] sm:$0xff] }
 0x137   : > { %1822 = vmatprep.subr.mxu1 %v2442_v44  ;;  %v741_v56 = vmul.f32 %v2308_v15, %v2253_v55  ;;  %v1016_v47 = vadd.f32 %v1000_v9, %v980_v27  ;;  %v1118_v34 = vmul.f32 %v2353_v36, %v2469_v35  ;;  %v777_v42 = vmul.f32 %v2268_v0, %v2261_v61  ;;  %v2507_v27 = vld [vmem:[#allocation2 + $0x18] sm:$0xff]  ;;  %v1271_v0 = vld [vmem:[%s3017_s5] sm:$0xff] }
 0x138   : > { %1838 = vmatpush3.msra.mxu1 %v2442_v44  ;;  %v813_v12 = vmul.f32 %v2392_v57, %v2264_v62  ;;  %v1204_v10 = vadd.f32 %v2337_v29, %v1168_v2  ;;  %v945_v49 = vadd.f32 %v929_v31, %v828_v3  ;;  %v930_v59 = vmul.f32 %v2343_v32, %v2276_v4 }
 0x139   : > { %1823 = vmatprep.subr.mxu1 %v2461_v1  ;;  %v966_v9 = vmul.f32 %v2283_v7, %v2279_v5  ;;  %v1133_v57 = vadd.f32 %v1117_v16, %v1016_v47  ;;  %v793_v15 = vadd.f32 %v777_v42, %v741_v56  ;;  %v1002_v29 = vmul.f32 %v2409_v13, %v2321_v20  ;;  %v2529_v47 = vld [vmem:[#allocation2 + $0x20] sm:$0xff] }
 0x13a   : > { %1839 = vmatpush3.msra.mxu1 %v2461_v1  ;;  %v3043_v31 = vrot.slane %v2360_v39, 7  ;;  %v3044_v2 = vrot.slane %v2345_v33, 7  ;;  %v1227_v25 = vadd.f32 %v2493_v23, %v1204_v10  ;;  %v981_v63 = vadd.f32 %v965_v48, %v945_v49  ;;  %1777 = vmatpush3.msra.mxu0 %v2425_v17 }
 0x13b   : > { %1824 = vmatprep.subr.mxu1 %v2488_v58  ;;  %v1155_v56 = vmul.f32 %v2356_v37, %v2360_v39  ;;  %v1169_v42 = vadd.f32 %v2415_v18, %v1133_v57  ;;  %v829_v19 = vadd.f32 %v813_v12, %v793_v15  ;;  %v871_v49 = vrot.slane %v2507_v27, 7  ;;  %1778 = vmatprep.subr.mxu0 %v2442_v44 }
 0x13c   : > { %v2521_v3 = vsel %vm693_vm3, %v3044_v2, %v3043_v31  ;;  %1840 = vmatpush3.msra.mxu1 %v2488_v58  ;;  %v742_v31 = vmul.f32 %v2364_v22, %v2253_v55  ;;  %v1243_v10 = vmax.f32 %v1227_v25, 0.0  ;;  %v1017_v48 = vadd.f32 %v1001_v46, %v981_v63  ;;  %v2537_v2 = vld [vmem:[#allocation2 + $0x81] sm:$0xff]  ;;  %1779 = vmatpush3.msra.mxu0 %v2442_v44 }
 0x13d   : > { %v1119_v16 = vmul.f32 %v2353_v36, %v2521_v3  ;;  %1825 = vmatprep.subr.mxu1 %v1271_v0  ;;  %v778_v38 = vmul.f32 %v2281_v6, %v2261_v61  ;;  %v814_v15 = vmul.f32 %v2323_v21, %v2264_v62  ;;  %v1205_v57 = vadd.f32 %v2429_v28, %v1169_v42  ;;  %v2549_v25 = vld [vmem:[#allocation2 + $0xc0] sm:$0xff] }
 0x13e   : > { %1841 = vmatpush3.msra.mxu1 %v1271_v0  ;;  %v946_v18 = vadd.f32 %v930_v59, %v829_v19  ;;  %v1191_v22 = vmul.f32 %v2288_v8, %v2537_v2  ;;  %v879_v63 = vrot.slane %v2529_v47, 7  ;;  %v1259_v17 = vmin.f32 %v1243_v10, 6.0  ;;  %1780 = vmatprep.subr.mxu0 %v2461_v1 }
 0x13f   : > { %v1134_v46 = vadd.f32 %v1118_v34, %v1017_v48  ;;  %v794_v12 = vadd.f32 %v778_v38, %v742_v31  ;;  %v931_v6 = vmul.f32 %v2469_v35, %v2276_v4  ;;  %v1228_v21 = vadd.f32 %v2493_v23, %v1205_v57  ;;  %1781 = vmatpush3.msra.mxu0 %v2461_v1 }
 0x140   : > { %v982_v19 = vadd.f32 %v966_v9, %v946_v18  ;;  %v967_v59 = vmul.f32 %v2345_v33, %v2279_v5  ;;  %v3045_v28 = vrot.slane %v2374_v43, 7  ;;  %v3046_v44 = vrot.slane %v2388_v50, 7  ;;  %1792 = vmatprep.mubr.f32.mxu1 %v1259_v17  ;;  %1782 = vmatprep.subr.mxu0 %v2488_v58 }
 0x141   : > { %v1170_v38 = vadd.f32 %v2473_v40, %v1134_v46  ;;  %v830_v34 = vadd.f32 %v814_v15, %v794_v12  ;;  %v1003_v31 = vmul.f32 %v2465_v30, %v2321_v20  ;;  %v1066_v9 = vrot.slane %v2549_v25, 7  ;;  %1783 = vmatpush3.msra.mxu0 %v2488_v58 }
 0x142   : > { %v1088_v42 = vsel %vm693_vm3, %v3046_v44, %v3045_v28  ;;  %v1244_v10 = vmax.f32 %v1228_v21, 0.0  ;;  %v1018_v48 = vadd.f32 %v1002_v29, %v982_v19  ;;  %v1156_v1 = vmul.f32 %v2356_v37, %v2374_v43  ;;  %1784 = vmatprep.subr.mxu0 %v1271_v0 }
 0x143   : > { %v2571_v57 = vsel %vm641_vm2, %v1088_v42, 0.0  ;;  %v1206_v40 = vadd.f32 %v2480_v51, %v1170_v38  ;;  %v947_v15 = vadd.f32 %v931_v6, %v830_v34  ;;  %v743_v18 = vmul.f32 %v2343_v32, %v2253_v55  ;;  %1785 = vmatpush3.msra.mxu0 %v1271_v0  ;;  %v2586_v6 = vld [vmem:[#allocation2 + $0x91] sm:$0xff] }
 0x144   : > { %v779_v17 = vmul.f32 %v2283_v7, %v2261_v61  ;;  %v1260_v29 = vmin.f32 %v1244_v10, 6.0  ;;  %v1135_v46 = vadd.f32 %v1119_v16, %v1018_v48  ;;  %v1120_v12 = vmul.f32 %v2353_v36, %v2571_v57 }
 0x145   : > { %v815_v21 = vmul.f32 %v2409_v13, %v2264_v62  ;;  %v1229_v58 = vadd.f32 %v2493_v23, %v1206_v40  ;;  %v983_v51 = vadd.f32 %v967_v59, %v947_v15  ;;  %v932_v32 = vmul.f32 %v2521_v3, %v2276_v4 }
 0x146   : > { %v795_v19 = vadd.f32 %v779_v17, %v743_v18  ;;  %1793 = vmatmul.mubr.f32.vlgmr.msra.gmra.mxu1 %v1260_v29  ;;  %v1171_v7 = vadd.f32 %v1155_v56, %v1135_v46  ;;  %v1192_v16 = vmul.f32 %v2288_v8, %v2586_v6  ;;  %v968_v28 = vmul.f32 %v2360_v39, %v2279_v5  ;;  %v2613_v46 = vld [vmem:[#allocation2 + $0x99] sm:$0xff] }
 0x147   : > { %v1004_v0 = vmul.f32 %v2537_v2, %v2321_v20  ;;  %v1245_v13 = vmax.f32 %v1229_v58, 0.0  ;;  %v1019_v44 = vadd.f32 %v1003_v31, %v983_v51  ;;  %v3047_v42 = vrot.slane %v2388_v50, 7 }
 0x148   : > { %v831_v59 = vadd.f32 %v815_v21, %v795_v19  ;;  %v3048_v38 = vrot.slane %v2374_v43, 7  ;;  %v1207_v56 = vadd.f32 %v1191_v22, %v1171_v7  ;;  %v1157_v10 = vmul.f32 %v2356_v37, %v2388_v50 }
 0x149   : > { %v744_v48 = vmul.f32 %v2469_v35, %v2253_v55  ;;  %v780_v40 = vmul.f32 %v2345_v33, %v2261_v61  ;;  %v1261_v31 = vmin.f32 %v1245_v13, 6.0  ;;  %v1136_v15 = vadd.f32 %v1120_v12, %v1019_v44 }
 0x14a   : > { %v2602_v34 = vsel %vm693_vm3, %v3048_v38, %v3047_v42  ;;  %v948_v18 = vadd.f32 %v932_v32, %v831_v59  ;;  %v816_v17 = vmul.f32 %v2465_v30, %v2264_v62  ;;  %v1230_v29 = vadd.f32 %v2493_v23, %v1207_v56 }
 0x14b   : > { %v1121_v22 = vmul.f32 %v2353_v36, %v2602_v34  ;;  %v796_v21 = vadd.f32 %v780_v40, %v744_v48  ;;  %v933_v35 = vmul.f32 %v2571_v57, %v2276_v4  ;;  %1795 = vmatprep.mubr.f32.mxu1 %v1261_v31  ;;  %v1172_v58 = vadd.f32 %v1156_v1, %v1136_v15 }
 0x14c   : > { %v984_v33 = vadd.f32 %v968_v28, %v948_v18  ;;  %v1193_v12 = vmul.f32 %v2288_v8, %v2613_v46  ;;  %v3049_v51 = vrot.slane %v2397_v60, 7  ;;  %v3050_v30 = vrot.slane %v2407_v11, 7 }
 0x14d   : > { %v1246_v32 = vmax.f32 %v1230_v29, 0.0  ;;  %v832_v7 = vadd.f32 %v816_v17, %v796_v21  ;;  %v969_v13 = vmul.f32 %v2374_v43, %v2279_v5  ;;  %v1005_v44 = vmul.f32 %v2586_v6, %v2321_v20 }
 0x14e   : > { %v1089_v19 = vsel %vm693_vm3, %v3050_v30, %v3049_v51  ;;  %v1208_v1 = vadd.f32 %v1192_v16, %v1172_v58  ;;  %v1020_v28 = vadd.f32 %v1004_v0, %v984_v33  ;;  %v1158_v42 = vmul.f32 %v2356_v37, %v2397_v60  ;;  %v2642_v16 = vld [vmem:[#allocation2 + $0xa9] sm:$0xff] }
 0x14f   : > { %v2633_v59 = vsel %vm641_vm2, %v1089_v19, 0.0  ;;  %v1262_v38 = vmin.f32 %v1246_v32, 6.0  ;;  %v949_v56 = vadd.f32 %v933_v35, %v832_v7  ;;  %v745_v48 = vmul.f32 %v2521_v3, %v2253_v55 }
 0x150   : > { %v781_v40 = vmul.f32 %v2360_v39, %v2261_v61  ;;  %v1231_v31 = vadd.f32 %v2493_v23, %v1208_v1  ;;  %v1137_v15 = vadd.f32 %v1121_v22, %v1020_v28  ;;  %v1122_v0 = vmul.f32 %v2353_v36, %v2633_v59 }
 0x151   : > { %v817_v18 = vmul.f32 %v2537_v2, %v2264_v62  ;;  %1796 = vmatmul.mubr.f32.gmra.mxu1 %v1262_v38  ;;  %v985_v17 = vadd.f32 %v969_v13, %v949_v56  ;;  %v1194_v29 = vmul.f32 %v2288_v8, %v2642_v16  ;;  %v934_v39 = vmul.f32 %v2602_v34, %v2276_v4 }
 0x152   : > { %v797_v3 = vadd.f32 %v781_v40, %v745_v48  ;;  %v1247_v21 = vmax.f32 %v1231_v31, 0.0  ;;  %v1173_v35 = vadd.f32 %v1157_v10, %v1137_v15  ;;  %v970_v22 = vmul.f32 %v2388_v50, %v2279_v5  ;;  %v661_v10 = vld [vmem:[#allocation2 + $0x1] sm:$0xff]  ;;  %v2679_v15 = vld [vmem:[#allocation2 + $0xb1] sm:$0xff] }
 0x153   : > { %v1006_v58 = vmul.f32 %v2613_v46, %v2321_v20  ;;  %v1021_v33 = vadd.f32 %v1005_v44, %v985_v17  ;;  %v3051_v2 = vmov %v3050_v30  ;;  %v3052_v30 = vrot.slane %v2397_v60, 7 }
 0x154   : > { %v833_v51 = vadd.f32 %v817_v18, %v797_v3  ;;  %v1159_v32 = vmul.f32 %v2356_v37, %v2407_v11  ;;  %v1263_v7 = vmin.f32 %v1247_v21, 6.0  ;;  %v1209_v13 = vadd.f32 %v1193_v12, %v1173_v35 }
 0x155   : > { %v2662_v19 = vsel %vm693_vm3, %v3052_v30, %v3051_v2  ;;  %v3053_v1 = vrot.slane %v2418_v24, 7  ;;  %v3054_v28 = vrot.slane %v2420_v26, 7  ;;  %v770_v38 = vmul.f32 %v2261_v61, %v2418_v24  ;;  %v2695_v2 = vld [vmem:[#allocation2 + $0x19] sm:$0xff] }
 0x156   : > { %v1138_v56 = vadd.f32 %v1122_v0, %v1021_v33  ;;  %v950_v48 = vadd.f32 %v934_v39, %v833_v51  ;;  %v1123_v40 = vmul.f32 %v2353_v36, %v2662_v19  ;;  %1798 = vmatprep.mubr.f32.mxu1 %v1263_v7  ;;  %v1232_v12 = vadd.f32 %v2493_v23, %v1209_v13 }
 0x157   : > { %v702_v44 = vsel %vm693_vm3, %v3054_v28, %v3053_v1  ;;  %v806_v17 = vmul.f32 %v2264_v62, %v661_v10  ;;  %v895_v0 = vsel %vm693_vm3, %v879_v63, %v871_v49  ;;  %v1195_v21 = vmul.f32 %v2288_v8, %v2679_v15  ;;  %v662_v1 = vld [vmem:[#allocation2 + $0x9] sm:$0xff] }
 0x158   : > { %v714_v31 = vsel %vm641_vm2, %v702_v44, 0.0  ;;  %v1174_v3 = vadd.f32 %v1158_v42, %v1138_v56  ;;  %v986_v39 = vadd.f32 %v970_v22, %v950_v48  ;;  %v2693_v35 = vsel %vm641_vm2, %v895_v0, 0.0 }
 0x159   : > { %v734_v18 = vmul.f32 %v2253_v55, %v714_v31  ;;  %v1248_v33 = vmax.f32 %v1232_v12, 0.0  ;;  %v2703_v30 = vsel %vm693_vm3, %v871_v49, %v879_v63  ;;  %v923_v42 = vmul.f32 %v2276_v4, %v2693_v35 }
 0x15a   : > { %v1210_v22 = vadd.f32 %v1194_v29, %v1174_v3  ;;  %v1022_v10 = vadd.f32 %v1006_v58, %v986_v39  ;;  %v959_v7 = vmul.f32 %v2279_v5, %v2507_v27  ;;  %v995_v13 = vmul.f32 %v2321_v20, %v2695_v2 }
 0x15b   : > { %v786_v51 = vadd.f32 %v770_v38, %v734_v18  ;;  %v1264_v28 = vmin.f32 %v1248_v33, 6.0  ;;  %v1112_v38 = vmul.f32 %v2353_v36, %v2304_v14  ;;  %v3055_v49 = vrot.slane %v2420_v26, 7  ;;  %v2728_v33 = vld [vmem:[#allocation2 + $0x21] sm:$0xff] }
 0x15c   : > { %v3056_v63 = vrot.slane %v2418_v24, 7  ;;  %v1233_v58 = vadd.f32 %v2493_v23, %v1210_v22  ;;  %v1139_v56 = vadd.f32 %v1123_v40, %v1022_v10  ;;  %v771_v31 = vmul.f32 %v2261_v61, %v2420_v26 }
 0x15d   : > { %v822_v44 = vadd.f32 %v806_v17, %v786_v51  ;;  %1799 = vmatmul.mubr.f32.gmra.mxu1 %v1264_v28  ;;  %v1148_v18 = vmul.f32 %v2356_v37, %v2246_v52  ;;  %v1184_v17 = vmul.f32 %v2288_v8, %v2250_v54  ;;  %v807_v24 = vmul.f32 %v2264_v62, %v662_v1 }
 0x15e   : > { %v694_v29 = vsel %vm693_vm3, %v3056_v63, %v3055_v49  ;;  %v1249_v0 = vmax.f32 %v1233_v58, 0.0  ;;  %v1175_v3 = vadd.f32 %v1159_v32, %v1139_v56  ;;  %v924_v40 = vmul.f32 %v2276_v4, %v2703_v30  ;;  %v3057_v56 = vld [vmem:[#allocation12_spill] sm:$0xff] }
 0x15f   : > { %v735_v48 = vmul.f32 %v2253_v55, %v694_v29  ;;  %v939_v12 = vadd.f32 %v923_v42, %v822_v44  ;;  %v960_v26 = vmul.f32 %v2279_v5, %v2529_v47  ;;  %v996_v42 = vmul.f32 %v2321_v20, %v2728_v33  ;;  %v2740_v44 = vld [vmem:[#allocation2 + $0xc8] sm:$0xff] }
 0x160   : > { %v1113_v22 = vmul.f32 %v2353_v36, %v2370_v41  ;;  %v1265_v10 = vmin.f32 %v1249_v0, 6.0  ;;  %v1211_v1 = vadd.f32 %v1195_v21, %v1175_v3  ;;  %v746_v32 = vmul.f32 %v2571_v57, %v2253_v55 }
 0x161   : > { %v787_v39 = vadd.f32 %v771_v31, %v735_v48  ;;  %v975_v51 = vadd.f32 %v959_v7, %v939_v12  ;;  %v1149_v7 = vmul.f32 %v2356_v37, %v2248_v53  ;;  %v782_v63 = vmul.f32 %v2374_v43, %v2261_v61 }
 0x162   : > { %v818_v29 = vmul.f32 %v2586_v6, %v2264_v62  ;;  %1801 = vmatprep.mubr.f32.mxu1 %v1265_v10  ;;  %v1234_v58 = vadd.f32 %v2493_v23, %v1211_v1  ;;  %v1185_v48 = vmul.f32 %v2288_v8, %v3057_v56  ;;  %v935_v57 = vmul.f32 %v2633_v59, %v2276_v4 }
 0x163   : > { %v823_v28 = vadd.f32 %v807_v24, %v787_v39  ;;  %v1011_v49 = vadd.f32 %v995_v13, %v975_v51  ;;  %v798_v31 = vadd.f32 %v782_v63, %v746_v32  ;;  %v971_v12 = vmul.f32 %v2397_v60, %v2279_v5 }
 0x164   : > { %v1074_v43 = vrot.slane %v2740_v44, 7  ;;  %v1250_v24 = vmax.f32 %v1234_v58, 0.0  ;;  %v1007_v6 = vmul.f32 %v2642_v16, %v2321_v20  ;;  %v747_v3 = vmul.f32 %v2602_v34, %v2253_v55  ;;  %v2781_v58 = vld [vmem:[#allocation2 + $0xc1] sm:$0xff] }
 0x165   : > { %v940_v21 = vadd.f32 %v924_v40, %v823_v28  ;;  %v1128_v13 = vadd.f32 %v1112_v38, %v1011_v49  ;;  %v834_v40 = vadd.f32 %v818_v29, %v798_v31  ;;  %v783_v51 = vmul.f32 %v2388_v50, %v2261_v61 }
 0x166   : > { %v1090_v38 = vsel %vm693_vm3, %v1074_v43, %v1066_v9  ;;  %v1266_v10 = vmin.f32 %v1250_v24, 6.0  ;;  %v819_v28 = vmul.f32 %v2613_v46, %v2264_v62  ;;  %v972_v29 = vmul.f32 %v2407_v11, %v2279_v5 }
 0x167   : > { %v976_v0 = vadd.f32 %v960_v26, %v940_v21  ;;  %v1164_v39 = vadd.f32 %v1148_v18, %v1128_v13  ;;  %v1160_v26 = vmul.f32 %v2356_v37, %v2549_v25  ;;  %v951_v34 = vadd.f32 %v935_v57, %v834_v40 }
 0x168   : > { %v2772_v18 = vsel %vm641_vm2, %v1090_v38, 0.0  ;;  %v799_v49 = vadd.f32 %v783_v51, %v747_v3  ;;  %1802 = vmatmul.mubr.f32.gmra.mxu1 %v1266_v10  ;;  %v1196_v13 = vmul.f32 %v2288_v8, %v2781_v58  ;;  %v1008_v31 = vmul.f32 %v2679_v15, %v2321_v20  ;;  %v2797_v38 = vld [vmem:[#allocation2 + $0xc9] sm:$0xff] }
 0x169   : > { %v1012_v1 = vadd.f32 %v996_v42, %v976_v0  ;;  %v1200_v32 = vadd.f32 %v1184_v17, %v1164_v39  ;;  %v1124_v50 = vmul.f32 %v2353_v36, %v2772_v18  ;;  %v936_v42 = vmul.f32 %v2662_v19, %v2276_v4 }
 0x16a   : > { %v987_v17 = vadd.f32 %v971_v12, %v951_v34  ;;  %v835_v21 = vadd.f32 %v819_v28, %v799_v49  ;;  %v736_v39 = vmul.f32 %v2693_v35, %v2253_v55  ;;  %v925_v28 = vmul.f32 %v2276_v4, %v2304_v14  ;;  %v3058_v49 = vld [vmem:[#allocation10_spill] sm:$0xff] }
 0x16b   : > { %v1129_v63 = vadd.f32 %v1113_v22, %v1012_v1  ;;  %v1223_v46 = vadd.f32 %v2493_v23, %v1200_v32  ;;  %v2787_v22 = vsel %vm693_vm3, %v1066_v9, %v1074_v43  ;;  %v1161_v9 = vmul.f32 %v2356_v37, %v2740_v44 }
 0x16c   : > { %v1125_v24 = vmul.f32 %v2353_v36, %v2787_v22  ;;  %v1023_v0 = vadd.f32 %v1007_v6, %v987_v17  ;;  %v952_v3 = vadd.f32 %v936_v42, %v835_v21  ;;  %v808_v43 = vmul.f32 %v2695_v2, %v2264_v62 }
 0x16d   : > { %v1165_v57 = vadd.f32 %v1149_v7, %v1129_v63  ;;  %v1239_v12 = vmax.f32 %v1223_v46, 0.0  ;;  %v772_v7 = vmul.f32 %v2507_v27, %v2261_v61  ;;  %v1197_v6 = vmul.f32 %v2288_v8, %v2797_v38 }
 0x16e   : > { %v1140_v10 = vadd.f32 %v1124_v50, %v1023_v0  ;;  %v988_v1 = vadd.f32 %v972_v29, %v952_v3  ;;  %v961_v32 = vmul.f32 %v2279_v5, %v2246_v52  ;;  %v997_v2 = vmul.f32 %v2321_v20, %v2250_v54  ;;  %v3059_v52 = vld [vmem:[#allocation7_spill] sm:$0xff] }
 0x16f   : > { %v1201_v40 = vadd.f32 %v1185_v48, %v1165_v57  ;;  %v1255_v51 = vmin.f32 %v1239_v12, 6.0  ;;  %v788_v48 = vadd.f32 %v772_v7, %v736_v39  ;;  %v1114_v63 = vmul.f32 %v2353_v36, %v3058_v49  ;;  %v3060_v3 = vld [vmem:[#allocation11_spill] sm:$0xff] }
 0x170   : > { %v1176_v27 = vadd.f32 %v1160_v26, %v1140_v10  ;;  %v1024_v34 = vadd.f32 %v1008_v31, %v988_v1  ;;  %v737_v29 = vmul.f32 %v2703_v30, %v2253_v55  ;;  %v773_v14 = vmul.f32 %v2529_v47, %v2261_v61  ;;  %v1042_v10 = vld [vmem:[#allocation2 + $0xd8] sm:$0xff] }
 0x171   : > { %v1224_v35 = vadd.f32 %v2493_v23, %v1201_v40  ;;  %1786 = vmatprep.mubr.f32.mxu0 %v1255_v51  ;;  %v824_v42 = vadd.f32 %v808_v43, %v788_v48  ;;  %v1150_v26 = vmul.f32 %v2356_v37, %v3059_v52  ;;  %v809_v21 = vmul.f32 %v2728_v33, %v2264_v62  ;;  %v3061_v40 = vld [vmem:[#allocation9_spill] sm:$0xff] }
 0x172   : > { %v1212_v46 = vadd.f32 %v1196_v13, %v1176_v27  ;;  %v1141_v17 = vadd.f32 %v1125_v24, %v1024_v34  ;;  %v789_v31 = vadd.f32 %v773_v14, %v737_v29  ;;  %v926_v12 = vmul.f32 %v2276_v4, %v2370_v41 }
 0x173   : > { %v1240_v50 = vmax.f32 %v1224_v35, 0.0  ;;  %v941_v57 = vadd.f32 %v925_v28, %v824_v42  ;;  %v1186_v47 = vmul.f32 %v2288_v8, %v3060_v3  ;;  %v962_v13 = vmul.f32 %v2279_v5, %v2248_v53  ;;  %v3062_v35 = vld [vmem:[#allocation8_spill] sm:$0xff]  ;;  %v1043_v28 = vld [vmem:[#allocation2 + $0xe0] sm:$0xff] }
 0x174   : > { %v1235_v0 = vadd.f32 %v2493_v23, %v1212_v46  ;;  %v1177_v30 = vadd.f32 %v1161_v9, %v1141_v17  ;;  %v825_v39 = vadd.f32 %v809_v21, %v789_v31  ;;  %v998_v33 = vmul.f32 %v2321_v20, %v3057_v56 }
 0x175   : > { %v1256_v54 = vmin.f32 %v1240_v50, 6.0  ;;  %v977_v24 = vadd.f32 %v961_v32, %v941_v57  ;;  %v1115_v7 = vmul.f32 %v2353_v36, %v3061_v40  ;;  %v748_v9 = vmul.f32 %v2633_v59, %v2253_v55 }
 0x176   : > { %v1251_v43 = vmax.f32 %v1235_v0, 0.0  ;;  %v1213_v41 = vadd.f32 %v1197_v6, %v1177_v30  ;;  %v784_v51 = vmul.f32 %v2397_v60, %v2261_v61  ;;  %v942_v53 = vadd.f32 %v926_v12, %v825_v39  ;;  %v3063_v60 = vld [vmem:[#allocation13_spill] sm:$0xff] }
 0x177   : > { %1787 = vmatmul.mubr.f32.vlgmr.msra.gmra.mxu0 %v1256_v54  ;;  %v1013_v1 = vadd.f32 %v997_v2, %v977_v24  ;;  %v1151_v48 = vmul.f32 %v2356_v37, %v3062_v35  ;;  %v820_v56 = vmul.f32 %v2642_v16, %v2264_v62  ;;  %v937_v59 = vmul.f32 %v2772_v18, %v2276_v4 }
 0x178   : > { %v1267_v32 = vmin.f32 %v1251_v43, 6.0  ;;  %v1236_v27 = vadd.f32 %v2493_v23, %v1213_v41  ;;  %v800_v6 = vadd.f32 %v784_v51, %v748_v9  ;;  %v978_v49 = vadd.f32 %v962_v13, %v942_v53 }
 0x179   : > { %v1130_v34 = vadd.f32 %v1114_v63, %v1013_v1  ;;  %v1187_v2 = vmul.f32 %v2288_v8, %v3063_v60  ;;  %v1067_v50 = vrot.slane %v1042_v10, 7  ;;  %v973_v16 = vmul.f32 %v2549_v25, %v2279_v5 }
 0x17a   : > { %1804 = vmatprep.mubr.f32.mxu1 %v1267_v32  ;;  %v1252_v42 = vmax.f32 %v1236_v27, 0.0  ;;  %v836_v29 = vadd.f32 %v820_v56, %v800_v6  ;;  %v1075_v14 = vrot.slane %v1043_v28, 7  ;;  %v1014_v17 = vadd.f32 %v998_v33, %v978_v49 }
 0x17b   : > { %v1166_v46 = vadd.f32 %v1150_v26, %v1130_v34  ;;  %v1009_v52 = vmul.f32 %v2781_v58, %v2321_v20  ;;  %v749_v18 = vmul.f32 %v2662_v19, %v2253_v55  ;;  %v785_v57 = vmul.f32 %v2407_v11, %v2261_v61  ;;  %v1058_v61 = vld [vmem:[#allocation2 + $0xd9] sm:$0xff] }
 0x17c   : > { %v1268_v63 = vmin.f32 %v1252_v42, 6.0  ;;  %v953_v21 = vadd.f32 %v937_v59, %v836_v29  ;;  %v1091_v54 = vsel %vm693_vm3, %v1075_v14, %v1067_v50  ;;  %v1131_v12 = vadd.f32 %v1115_v7, %v1014_v17  ;;  %v1647_v59 = vld [vmem:[%s2145_s21 + $0x30] sm:$0xff] }
 0x17d   : > { %v1202_v31 = vadd.f32 %v1186_v47, %v1166_v46  ;;  %v1106_v25 = vsel %vm641_vm2, %v1091_v54, 0.0  ;;  %v821_v26 = vmul.f32 %v2679_v15, %v2264_v62  ;;  %v801_v19 = vadd.f32 %v785_v57, %v749_v18 }
 0x17e   : > { %1805 = vmatmul.mubr.f32.gmra.mxu1 %v1268_v63  ;;  %v989_v58 = vadd.f32 %v973_v16, %v953_v21  ;;  %v1126_v55 = vmul.f32 %v2353_v36, %v1106_v25  ;;  %v938_v0 = vmul.f32 %v2787_v22, %v2276_v4  ;;  %v1167_v3 = vadd.f32 %v1151_v48, %v1131_v12  ;;  %v1650_v16 = vld [vmem:[%s2145_s21 + $0x48] sm:$0xff]  ;;  %v1651_v12 = vld [vmem:[%s2145_s21 + $0x50] sm:$0xff] }
 0x17f   : > { %v1225_v30 = vadd.f32 %v2493_v23, %v1202_v31  ;;  %v1162_v47 = vmul.f32 %v2356_v37, %v1042_v10  ;;  %v837_v13 = vadd.f32 %v821_v26, %v801_v19  ;;  %v974_v24 = vmul.f32 %v2740_v44, %v2279_v5  ;;  %v1059_v44 = vld [vmem:[#allocation2 + $0xe1] sm:$0xff]  ;;  %v1652_v31 = vld [vmem:[%s2145_s21 + $0x58] sm:$0xff] }
 0x180   : > { %v1025_v11 = vadd.f32 %v1009_v52, %v989_v58  ;;  %v1203_v15 = vadd.f32 %v1187_v2, %v1167_v3  ;;  %v1083_v39 = vsel %vm693_vm3, %v1067_v50, %v1075_v14  ;;  %v1198_v40 = vmul.f32 %v2288_v8, %v1058_v61  ;;  %v1649_v14 = vld [vmem:[%s2145_s21 + $0x40] sm:$0xff]  ;;  %v1654_v61 = vld [vmem:[%s2145_s21 + $0x68] sm:$0xff] }
 0x181   : > { %v1241_v62 = vmax.f32 %v1225_v30, 0.0  ;;  %v954_v4 = vadd.f32 %v938_v0, %v837_v13  ;;  %v1010_v22 = vmul.f32 %v2797_v38, %v2321_v20  ;;  %v1127_v51 = vmul.f32 %v2353_v36, %v1083_v39 }
 0x182   : > { %v1142_v33 = vadd.f32 %v1126_v55, %v1025_v11  ;;  %v1226_v43 = vadd.f32 %v2493_v23, %v1203_v15  ;;  %v1163_v1 = vmul.f32 %v2356_v37, %v1043_v28  ;;  %v1199_v38 = vmul.f32 %v2288_v8, %v1059_v44  ;;  %v1648_v28 = vld [vmem:[%s2145_s21 + $0x38] sm:$0xff]  ;;  %v2884_v8 = vld [vmem:[%s3018_s6] ss:$0 sm:$0xff] }
 0x183   : > { %v1257_v7 = vmin.f32 %v1241_v62, 6.0  ;;  %v990_v9 = vadd.f32 %v974_v24, %v954_v4  ;;  %v1463_v49 = vsel %vm323_vm1, %v1648_v28, 0.0  ;;  %v1465_v17 = vsel %vm323_vm1, %v1650_v16, 0.0  ;;  %v1653_v11 = vld [vmem:[%s2145_s21 + $0x60] sm:$0xff]  ;;  %v1644_v4 = vld [vmem:[%s2145_s21 + $0x18] sm:$0xff] }
 0x184   : > { %v1178_v41 = vadd.f32 %v1162_v47, %v1142_v33  ;;  %v1242_v5 = vmax.f32 %v1226_v43, 0.0  ;;  %v1464_v63 = vsel %vm323_vm1, %v1649_v14, 0.0  ;;  %v1467_v26 = vsel %vm323_vm1, %v1652_v31, 0.0 }
 0x185   : > { %1789 = vmatprep.mubr.f32.mxu0 %v1257_v7  ;;  %v1026_v45 = vadd.f32 %v1010_v22, %v990_v9  ;;  %v1466_v19 = vsel %vm323_vm1, %v1651_v12, 0.0  ;;  %v1469_v13 = vsel %vm323_vm1, %v1654_v61, 0.0  ;;  %v1468_v15 = vsel %vm323_vm1, %v1653_v11, 0.0  ;;  %v1643_v22 = vld [vmem:[%s2145_s21 + $0x10] sm:$0xff] }
 0x186   : > { %v1214_v10 = vadd.f32 %v1198_v40, %v1178_v41  ;;  %v1258_v53 = vmin.f32 %v1242_v5, 6.0  ;;  %v1459_v43 = vsel %vm323_vm1, %v1644_v4, 0.0 }
 0x187   : > { %v1143_v20 = vadd.f32 %v1127_v51, %v1026_v45  ;;  %v1458_v51 = vsel %vm323_vm1, %v1643_v22, 0.0  ;;  %v1656_v45 = vld [vmem:[%s2145_s21 + $0x78] sm:$0xff] }
 0x188   : > { %v1237_v35 = vadd.f32 %v2493_v23, %v1214_v10  ;;  %1790 = vmatmul.mubr.f32.gmra.mxu0 %v1258_v53 }
 0x189   : > { %v1179_v56 = vadd.f32 %v1163_v1, %v1143_v20  ;;  %v1655_v1 = vld [vmem:[%s2145_s21 + $0x70] sm:$0xff] }
 0x18a   : > { %v1253_v48 = vmax.f32 %v1237_v35, 0.0  ;;  %v1471_v35 = vsel %vm323_vm1, %v1656_v45, 0.0 }
 0x18b   : > { %v1215_v36 = vadd.f32 %v1199_v38, %v1179_v56 }
 0x18c   : > { %v1269_v32 = vmin.f32 %v1253_v48, 6.0  ;;  %v1470_v48 = vsel %vm323_vm1, %v1655_v1, 0.0 }
 0x18d   : > { %v1238_v27 = vadd.f32 %v2493_v23, %v1215_v36  ;;  %v1462_v23 = vsel %vm323_vm1, %v1647_v59, 0.0 }
 0x18e   : > { %1807 = vmatprep.mubr.f32.mxu1 %v1269_v32 }
 0x18f   : > { %v1254_v6 = vmax.f32 %v1238_v27, 0.0  ;;  %v1646_v27 = vld [vmem:[%s2145_s21 + $0x28] sm:$0xff] }
 0x190   : > { %v1461_v28 = vsel %vm323_vm1, %v1646_v27, 0.0 }
 0x191   : > { %v1270_v37 = vmin.f32 %v1254_v6, 6.0  ;;  %v1645_v6 = vld [vmem:[%s2145_s21 + $0x20] sm:$0xff] }
 0x193   : > { %1808 = vmatmul.mubr.f32.gmra.mxu1 %v1270_v37 }
 0x206   : > { %v1794_v34 = vpop.f32.mrf.mxu1 }
 0x207   : > { %v1386_v60 = vadd.f32 %v1794_v34, %v2884_v8 }
 0x208   : > { %v1380_v2 = vpop.f32.mrf.mxu1 }
 0x209   : > { %v1479_v50 = vadd.f32 %v1463_v49, %v1386_v60  ;;  %v1381_v42 = vadd.f32 %v2884_v8, %v1380_v2  ;;  %v1460_v49 = vsel %vm323_vm1, %v1645_v6, 0.0 }
 0x20b   : > { %1495 = vst [vmem:[%s2213_s23 + $0x28] sm:$0xff] %v1479_v50  ;;  %v1478_v29 = vadd.f32 %v1462_v23, %v1381_v42  ;;  %v1658_v50 = vld [vmem:[%s2145_s21 + $0x88] sm:$0xff]  ;;  %v1657_v42 = vld [vmem:[%s2145_s21 + $0x80] sm:$0xff]  ;;  %s2961_s21 = scalar_lea.sflag [#allocation4], %s283_s20 }
 0x20c   : > { %v1473_v16 = vsel %vm323_vm1, %v1658_v50, 0.0 }
 0x20d   : > { %1494 = vst [vmem:[%s2213_s23 + $0x20] sm:$0xff] %v1478_v29 }
 0x211   : > { %v1797_v46 = vpop.f32.mrf.mxu1 }
 0x212   : > { %v1396_v52 = vadd.f32 %v1797_v46, %v2884_v8 }
 0x213   : > { %v1390_v18 = vpop.f32.mrf.mxu1 }
 0x214   : > { %v1481_v21 = vadd.f32 %v1465_v17, %v1396_v52  ;;  %v1391_v54 = vadd.f32 %v2884_v8, %v1390_v18  ;;  %v1472_v17 = vsel %vm323_vm1, %v1657_v42, 0.0 }
 0x216   : > { %1497 = vst [vmem:[%s2213_s23 + $0x38] sm:$0xff] %v1481_v21  ;;  %v1480_v57 = vadd.f32 %v1464_v63, %v1391_v54 }
 0x218   : > { %1496 = vst [vmem:[%s2213_s23 + $0x30] sm:$0xff] %v1480_v57 }
 0x21d   : > { %v1800_v25 = vpop.f32.mrf.mxu1 }
 0x21e   : > { %v1406_v58 = vadd.f32 %v1800_v25, %v2884_v8 }
 0x21f   : > { %v1400_v55 = vpop.f32.mrf.mxu1 }
 0x220   : > { %v1483_v0 = vadd.f32 %v1467_v26, %v1406_v58  ;;  %v1401_v30 = vadd.f32 %v2884_v8, %v1400_v55 }
 0x222   : > { %1499 = vst [vmem:[%s2213_s23 + $0x48] sm:$0xff] %v1483_v0  ;;  %v1482_v3 = vadd.f32 %v1466_v19, %v1401_v30 }
 0x224   : > { %1498 = vst [vmem:[%s2213_s23 + $0x40] sm:$0xff] %v1482_v3 }
 0x228   : > { %v1803_v47 = vpop.f32.mrf.mxu1 }
 0x229   : > { %v1416_v24 = vadd.f32 %v1803_v47, %v2884_v8 }
 0x22a   : > { %v1410_v62 = vpop.f32.mrf.mxu1 }
 0x22b   : > { %v1485_v39 = vadd.f32 %v1469_v13, %v1416_v24  ;;  %v1411_v33 = vadd.f32 %v2884_v8, %v1410_v62 }
 0x22d   : > { %1501 = vst [vmem:[%s2213_s23 + $0x58] sm:$0xff] %v1485_v39  ;;  %v1484_v40 = vadd.f32 %v1468_v15, %v1411_v33 }
 0x22f   : > { %1500 = vst [vmem:[%s2213_s23 + $0x50] sm:$0xff] %v1484_v40 }
 0x237   : > { %v1788_v7 = vpop.f32.mrf.mxu0 }
 0x238   : > { %v1366_v41 = vadd.f32 %v1788_v7, %v2884_v8 }
 0x239   : > { %v1360_v9 = vpop.f32.mrf.mxu0 }
 0x23a   : > { %v1475_v5 = vadd.f32 %v1459_v43, %v1366_v41  ;;  %v1361_v44 = vadd.f32 %v2884_v8, %v1360_v9 }
 0x23c   : > { %1491 = vst [vmem:[%s2213_s23 + $0x8] sm:$0xff] %v1475_v5  ;;  %v1474_v10 = vadd.f32 %v1458_v51, %v1361_v44 }
 0x23e   : > { %1490 = vst [vmem:[%s2213_s23] sm:$0xff] %v1474_v10  ;;  %v1806_v53 = vpop.f32.mrf.mxu1 }
 0x23f   : > { %v1426_v20 = vadd.f32 %v1806_v53, %v2884_v8 }
 0x240   : > { %v1420_v38 = vpop.f32.mrf.mxu1 }
 0x241   : > { %v1487_v56 = vadd.f32 %v1471_v35, %v1426_v20  ;;  %v1421_v32 = vadd.f32 %v2884_v8, %v1420_v38 }
 0x243   : > { %1503 = vst [vmem:[%s2213_s23 + $0x68] sm:$0xff] %v1487_v56  ;;  %v1486_v36 = vadd.f32 %v1470_v48, %v1421_v32 }
 0x245   : > { %1502 = vst [vmem:[%s2213_s23 + $0x60] sm:$0xff] %v1486_v36 }
 0x248   : > { %v1791_v37 = vpop.f32.mrf.mxu0 }
 0x249   : > { %v1376_v59 = vadd.f32 %v1791_v37, %v2884_v8 }
 0x24a   : > { %v1370_v34 = vpop.f32.mrf.mxu0 }
 0x24b   : > { %v1477_v60 = vadd.f32 %v1461_v28, %v1376_v59  ;;  %v1371_v2 = vadd.f32 %v2884_v8, %v1370_v34 }
 0x24d   : > { %1493 = vst [vmem:[%s2213_s23 + $0x18] sm:$0xff] %v1477_v60  ;;  %v1476_v23 = vadd.f32 %v1460_v49, %v1371_v2 }
 0x24f   : > { %1492 = vst [vmem:[%s2213_s23 + $0x10] sm:$0xff] %v1476_v23 }
 0x253   : > { %v1809_v29 = vpop.f32.mrf.mxu1 }
 0x254   : > { %v1436_v14 = vadd.f32 %v1809_v29, %v2884_v8 }
 0x255   : > { %v1430_v46 = vpop.f32.mrf.mxu1 }
 0x256   : > { %v1489_v52 = vadd.f32 %v1473_v16, %v1436_v14  ;;  %v1431_v18 = vadd.f32 %v2884_v8, %v1430_v46 }
 0x258   : > { %1505 = vst [vmem:[%s2213_s23 + $0x78] sm:$0xff] %v1489_v52  ;;  %v1488_v63 = vadd.f32 %v1472_v17, %v1431_v18 }
 0x25a   : > { %1504 = vst [vmem:[%s2213_s23 + $0x70] sm:$0xff] %v1488_v63 }
 0x25b   : > { %1932 = shalt.err (!%p1929_p9)
}
 0x25c   : > { %s1933_s20 = scalar_lea.hbm %s2953_s22, 2048  ;;  %s1937_s18 = scalar_lea.hbm %s3019_s7, 8192 }
 0x25d   : > { %p1934_p10 = scmp.ne.s32.totalorder %s2953_s22, %s1933_s20  ;;  %p1938_p13 = scmp.lt.s32.totalorder %s2953_s22, %s3019_s7 }
 0x25e   : > { %p1939_p0 = scmp.lt.s32.totalorder %s1937_s18, %s1933_s20 }
 0x25f   : > { %p1935_p11 = pnand %p1934_p10, %p2110_p3 }
 0x260   : > { %p1940_p1 = por %p1939_p0, %p1938_p13 }
 0x261   : > { %p1936_p12 = pneg %p1935_p11 }
 0x263   : > { %p1941_p2 = pnand %p1940_p1, %p1936_p12 }
 0x265   : > { %1944 = shalt.err (!%p1941_p2)
}
 0x266   : > { %s2017_s10 = smov 128   ;;  %s2018_s13 = smov 8  }
 0x267   : > { %1843 = dma.vmem_to_hbm [thread:$0]  (%p2110_p3), %s2955_s12, 2048, %s2953_s22, %s2961_s21, %s2017_s10, %s2017_s10, %s2018_s13  }
 0x268 PF: > { %p1849_p4 = scmp.ge.s32.totalorder %s2011_s8, 2  ;;  %s1538_s9 = sand.u32 1, %s1983_s24  }
 0x269   : > { %s1539_s16 = scalar_lea.sflag [#allocation4], %s1538_s9 }
 0x26a   : > { %p1846_p5 = pnand %p1849_p4, %p2119_p8 }
 0x26c   : > { %p1847_p6 = pneg %p1846_p5 }
 0x26e   : > { %1978 = dma.done.wait (%p1847_p6), %s1539_s16, 2048  }
 0x26f   : > { %1980 = vsyncadd (%p1847_p6), %s1539_s16, 4294965248  ;;  %s20_s8 = sadd.s32 1, %s2011_s8   ;;  %s3064_s14 = sld [smem:[#allocation6_spill]] }
 0x270   : > { %p17_p7 = scmp.ge.s32.totalorder %s20_s8, 6   ;;  %s3065_s24 = smov %s1987_s25 }
 0x271   : > { %s3066_s25 = smov %s1991_s26  ;;  %s3067_s26 = smov %s2128_s19 }
 0x272   : > { %s3068_s27 = smov %s2003_s29  ;;  %s3069_s28 = smov %s2007_s30 }
 0x273   : > { %s3070_s29 = smov %s3073_s11  ;;  %19 = sbr.rel (!%p17_p7) target bundleno = 5 (0x5), region = 96 }
 0x275   : > { %s3071_s30 = smov %s3064_s14 }
 0x278   :  { %1544 = vsyncpa [#allocation4], 1 }
 0x279   :  { %1546 = vsyncpa [#allocation4 + $0x1], 1 }

</bundles_post_ra>
